<compile_context>
chip_gen: v7x
topology: tpu7x:2x2x1
jax: 0.10.0
libtpu: 0.0.40
codegen_flags: <defaults>
</compile_context>

<pallas_src>
import jax
import jax.numpy as jnp
from jax import lax
from jax.experimental import pallas as pl
from jax.experimental.pallas import tpu as pltpu

LN_EPS = 1e-5          # PyTorch LayerNorm default
NEG_INF = -1e30        # additive mask value (cross-batch / padded keys)
FF_CHUNK = 512         # d_ff tile (2048 -> 4 chunks)
T_PAD = 128            # lane-padded classifier width (n_tokens=64 -> 128)


# ---------------------------------------------------------------------------
# Model config
# ---------------------------------------------------------------------------
class Config:
    n_tokens = 64
    d_hidden = 32
    patch_height = 8
    patch_width = 8
    n_patches = 4          # (16/8) * (16/8)
    max_scene_size = 8     # text length
    n_head = 4
    n_layers = 2
    pad_idx = 0
    d_ff = 2048            # PyTorch TransformerEncoderLayer default


def _ln(x, g, b):
    """LayerNorm over the last dim (biased variance, matches PyTorch)."""
    mean = jnp.mean(x, axis=-1, keepdims=True)
    xc = x - mean
    var = jnp.mean(xc * xc, axis=-1, keepdims=True)
    return xc * lax.rsqrt(var + LN_EPS) * g + b


# ---------------------------------------------------------------------------
# Fused whole-model kernel (one grid step == one encoder layer)
# ---------------------------------------------------------------------------
def _make_model_kernel(*, B, S, NP, D, nh, nl, dff):
    BL = B * (NP + S)
    n_img = B * NP
    hd = D // nh
    scale = 1.0 / float(hd) ** 0.5
    n_chunks = dff // FF_CHUNK

    def kernel(patches_ref, text_ref, img_add_ref, mask_ref,
               pe_ln1_g, pe_ln1_b, pe_w, pe_b, pe_ln2_g, pe_ln2_b,
               ln1_g, ln1_b, wqkv, bqkv, wo, ob,
               ln2_g, ln2_b, ff1_w, ff1_b, ff2_w, ff2_b,
               norm_g, norm_b, cls_w, cls_b,
               o_ref, x_scr):
        layer = pl.program_id(0)

        # ---- first grid step: patch embedding + aligned sequence assembly --
        @pl.when(layer == 0)
        def _():
            pf = _ln(patches_ref[...], pe_ln1_g[...], pe_ln1_b[...])
            pf = jnp.dot(pf, pe_w[...],
                         preferred_element_type=jnp.float32) + pe_b[...]
            # image rows [0:8) and text rows [8:24) -> 8-sublane aligned stores
            x_scr[0:n_img, :] = (_ln(pf, pe_ln2_g[...], pe_ln2_b[...])
                                 + img_add_ref[...])
            x_scr[n_img:BL, :] = text_ref[...]

        x = x_scr[...]                      # (BL, D) residual stream
        mask = mask_ref[...]                # (BL, BL) additive mask

        # ---- self-attention block (norm_first) -----------------------------
        x2 = _ln(x, ln1_g[...], ln1_b[...])
        qkv = jnp.dot(x2, wqkv[...],
                      preferred_element_type=jnp.float32) + bqkv[...]   # (BL,3D)
        heads = []
        for h in range(nh):
            q = qkv[:, h * hd:(h + 1) * hd]
            k = qkv[:, D + h * hd:D + (h + 1) * hd]
            v = qkv[:, 2 * D + h * hd:2 * D + (h + 1) * hd]
            s = lax.dot_general(q, k, (((1,), (1,)), ((), ())),
                                preferred_element_type=jnp.float32) * scale
            s = s + mask
            s = s - jnp.max(s, axis=-1, keepdims=True)
            p = jnp.exp(s)
            p = p * pl.reciprocal(jnp.sum(p, axis=-1, keepdims=True),
                                  approx=True)
            heads.append(jnp.dot(p, v, preferred_element_type=jnp.float32))
        attn = jnp.concatenate(heads, axis=-1)                         # (BL, D)
        x = x + jnp.dot(attn, wo[...],
                        preferred_element_type=jnp.float32) + ob[...]

        # ---- feed-forward block, chunked over d_ff (bf16 weights, f32 acc) -
        x2 = _ln(x, ln2_g[...], ln2_b[...]).astype(jnp.bfloat16)

        def ffn_chunk(c, acc):
            h1 = jnp.dot(x2, ff1_w[c],
                         preferred_element_type=jnp.float32) + ff1_b[c]
            h1 = jnp.maximum(h1, 0.0).astype(jnp.bfloat16)
            return acc + jnp.dot(h1, ff2_w[c],
                                 preferred_element_type=jnp.float32)

        ffn = lax.fori_loop(0, n_chunks, ffn_chunk,
                            jnp.zeros((BL, D), jnp.float32))
        x = x + ffn + ff2_b[...]
        x_scr[...] = x

        # ---- last grid step: final LayerNorm + classifier ------------------
        @pl.when(layer == nl - 1)
        def _():
            xn = _ln(x, norm_g[...], norm_b[...])
            o_ref[...] = jnp.dot(xn, cls_w[...],
                                 preferred_element_type=jnp.float32) + cls_b[...]

    return kernel


# ---------------------------------------------------------------------------
# Parameters
# ---------------------------------------------------------------------------
def init_params(cfg, key):
    keys = iter(jax.random.split(key, 64))

    def nrm(shape, scale=0.02, dtype=jnp.float32):
        return (scale * jax.random.normal(next(keys), shape)).astype(dtype)

    ps = cfg.patch_height * cfg.patch_width * 3
    D, nl, nh, dff = cfg.d_hidden, cfg.n_layers, cfg.n_head, cfg.d_ff
    n_chunks = dff // FF_CHUNK
    L = cfg.n_patches + cfg.max_scene_size
    return dict(
        word_emb=nrm((cfg.n_tokens, D), 1.0),
        pe_ln1_g=jnp.ones((1, ps), jnp.float32),
        pe_ln1_b=jnp.zeros((1, ps), jnp.float32),
        pe_w=nrm((ps, D)),
        pe_b=jnp.zeros((1, D), jnp.float32),
        pe_ln2_g=jnp.ones((1, D), jnp.float32),
        pe_ln2_b=jnp.zeros((1, D), jnp.float32),
        pos_emb=nrm((L, D), 1.0),
        type_image=nrm((1, D), 1.0),
        type_scene=nrm((1, D), 1.0),
        ln1_g=jnp.ones((nl, 1, D), jnp.float32),
        ln1_b=jnp.zeros((nl, 1, D), jnp.float32),
        # fused per-layer QKV / out-projection weights
        wqkv=nrm((nl, D, 3 * D)),
        bqkv=jnp.zeros((nl, 1, 3 * D), jnp.float32),
        wo=nrm((nl, D, D)),
        out_b=jnp.zeros((nl, 1, D), jnp.float32),
        ln2_g=jnp.ones((nl, 1, D), jnp.float32),
        ln2_b=jnp.zeros((nl, 1, D), jnp.float32),
        # FFN weights stored bf16, pre-split into d_ff chunks on a leading axis
        ff1_w=nrm((nl, n_chunks, D, FF_CHUNK), dtype=jnp.bfloat16),
        ff1_b=jnp.zeros((nl, n_chunks, 1, FF_CHUNK), jnp.float32),
        ff2_w=nrm((nl, n_chunks, FF_CHUNK, D), dtype=jnp.bfloat16),
        ff2_b=jnp.zeros((nl, 1, D), jnp.float32),
        norm_g=jnp.ones((1, D), jnp.float32),
        norm_b=jnp.zeros((1, D), jnp.float32),
        cls_w=nrm((D, cfg.n_tokens)),
        cls_b=jnp.zeros((1, cfg.n_tokens), jnp.float32),
    )


# ---------------------------------------------------------------------------
# Forward pass (glue + single fused pallas_call over the layer grid)
# ---------------------------------------------------------------------------
def multimodal_forward(params, image, text, cfg):
    B, C, Himg, Wimg = image.shape
    ph, pw = cfg.patch_height, cfg.patch_width
    D, nh, nl, dff = cfg.d_hidden, cfg.n_head, cfg.n_layers, cfg.d_ff
    hh, ww = Himg // ph, Wimg // pw
    NP = hh * ww
    S = text.shape[1]
    L = NP + S
    BL = B * L
    ps = ph * pw * C
    n_img = B * NP

    # glue: Rearrange 'b c (h p1) (w p2) -> b (h w) (p1 p2 c)', flattened b-major
    patches = image.reshape(B, C, hh, ph, ww, pw)
    patches = jnp.transpose(patches, (0, 2, 4, 3, 5, 1)).reshape(n_img, ps)

    # glue: additive terms in the permuted layout [img rows | text rows]
    img_add = jnp.tile(params["pos_emb"][:NP] + params["type_image"], (B, 1))
    text_plus = (params["word_emb"][text].reshape(B * S, D)
                 + params["type_scene"]
                 + jnp.tile(params["pos_emb"][NP:L], (B, 1)))

    # glue: fused additive attention mask for the permuted row order
    batch_id = jnp.concatenate([jnp.repeat(jnp.arange(B), NP),
                                jnp.repeat(jnp.arange(B), S)])
    key_pad = jnp.concatenate([jnp.zeros((n_img,), dtype=bool),
                               (text == cfg.pad_idx).reshape(B * S)])
    blocked = (batch_id[:, None] != batch_id[None, :]) | key_pad[None, :]
    attn_mask = jnp.where(blocked, NEG_INF, 0.0).astype(jnp.float32)

    # glue: lane-pad classifier to 128 (dense output stores); sliced back below
    cls_w = jnp.pad(params["cls_w"], ((0, 0), (0, T_PAD - cfg.n_tokens)))
    cls_b = jnp.pad(params["cls_b"], ((0, 0), (0, T_PAD - cfg.n_tokens)))

    kernel = _make_model_kernel(B=B, S=S, NP=NP, D=D, nh=nh, nl=nl, dff=dff)

    const_inputs = [
        patches, text_plus, img_add, attn_mask,
        params["pe_ln1_g"], params["pe_ln1_b"], params["pe_w"], params["pe_b"],
        params["pe_ln2_g"], params["pe_ln2_b"],
    ]
    layer_inputs = [
        params["ln1_g"], params["ln1_b"], params["wqkv"], params["bqkv"],
        params["wo"], params["out_b"],
        params["ln2_g"], params["ln2_b"],
        params["ff1_w"], params["ff1_b"], params["ff2_w"], params["ff2_b"],
    ]
    tail_inputs = [params["norm_g"], params["norm_b"], cls_w, cls_b]

    def const_spec(arr):
        r = arr.ndim
        return pl.BlockSpec(arr.shape, lambda i, _r=r: (0,) * _r)

    def layer_spec(arr):
        r = arr.ndim
        return pl.BlockSpec((None,) + tuple(arr.shape[1:]),
                            lambda i, _r=r: (i,) + (0,) * (_r - 1))

    in_specs = ([const_spec(a) for a in const_inputs]
                + [layer_spec(a) for a in layer_inputs]
                + [const_spec(a) for a in tail_inputs])

    logits_p = pl.pallas_call(
        kernel,
        out_shape=jax.ShapeDtypeStruct((BL, T_PAD), jnp.float32),
        grid=(nl,),
        in_specs=in_specs,
        out_specs=pl.BlockSpec((BL, T_PAD), lambda i: (0, 0)),
        scratch_shapes=[pltpu.VMEM((BL, D), jnp.float32)],   # residual stream
        compiler_params=pltpu.CompilerParams(
            dimension_semantics=("arbitrary",)),
    )(*const_inputs, *layer_inputs, *tail_inputs)

    # glue: slice padded lanes, un-permute rows back to (B, NP+S, n_tokens)
    logits = logits_p[:, :cfg.n_tokens]
    img_logits = logits[:n_img].reshape(B, NP, cfg.n_tokens)
    txt_logits = logits[n_img:].reshape(B, S, cfg.n_tokens)
    return jnp.concatenate([img_logits, txt_logits], axis=1)


# ---------------------------------------------------------------------------
if __name__ == "__main__":
    cfg = Config()
    key = jax.random.PRNGKey(0)
    k_param, k_img, k_txt = jax.random.split(key, 3)

    params = init_params(cfg, k_param)
    image = jax.random.normal(k_img, (2, 3, 16, 16), dtype=jnp.float32)   # NCHW
    text = jax.random.randint(k_txt, (2, cfg.max_scene_size), 0, cfg.n_tokens,
                              dtype=jnp.int32)

    fwd = jax.jit(lambda p, img, txt: multimodal_forward(p, img, txt, cfg))
    out = fwd(params, image, text)
    jax.block_until_ready(out)

    expected = (2, cfg.n_patches + cfg.max_scene_size, cfg.n_tokens)
    assert out.shape == expected, (out.shape, expected)
    assert bool(jnp.all(jnp.isfinite(out)))
    # TODO(synk): dropout (p=0.1 in MHA/FFN) omitted — eval-mode semantics only.
    print("KERNEL_OK")
</pallas_src>

<mosaic_0001>
module attributes {stable_mosaic.version = 11 : i64} {
  func.func @kernel(%arg0: i32, %arg1: memref<8x192xf32, #tpu.memory_space<vmem>>, %arg2: memref<16x32xf32, #tpu.memory_space<vmem>>, %arg3: memref<8x32xf32, #tpu.memory_space<vmem>>, %arg4: memref<24x24xf32, #tpu.memory_space<vmem>>, %arg5: memref<1x192xf32, #tpu.memory_space<vmem>>, %arg6: memref<1x192xf32, #tpu.memory_space<vmem>>, %arg7: memref<192x32xf32, #tpu.memory_space<vmem>>, %arg8: memref<1x32xf32, #tpu.memory_space<vmem>>, %arg9: memref<1x32xf32, #tpu.memory_space<vmem>>, %arg10: memref<1x32xf32, #tpu.memory_space<vmem>>, %arg11: memref<1x1x32xf32, #tpu.memory_space<vmem>>, %arg12: memref<1x1x32xf32, #tpu.memory_space<vmem>>, %arg13: memref<1x32x96xf32, #tpu.memory_space<vmem>>, %arg14: memref<1x1x96xf32, #tpu.memory_space<vmem>>, %arg15: memref<1x32x32xf32, #tpu.memory_space<vmem>>, %arg16: memref<1x1x32xf32, #tpu.memory_space<vmem>>, %arg17: memref<1x1x32xf32, #tpu.memory_space<vmem>>, %arg18: memref<1x1x32xf32, #tpu.memory_space<vmem>>, %arg19: memref<1x4x32x512xbf16, #tpu.memory_space<vmem>>, %arg20: memref<1x4x1x512xf32, #tpu.memory_space<vmem>>, %arg21: memref<1x4x512x32xbf16, #tpu.memory_space<vmem>>, %arg22: memref<1x1x32xf32, #tpu.memory_space<vmem>>, %arg23: memref<1x32xf32, #tpu.memory_space<vmem>>, %arg24: memref<1x32xf32, #tpu.memory_space<vmem>>, %arg25: memref<32x128xf32, #tpu.memory_space<vmem>>, %arg26: memref<1x128xf32, #tpu.memory_space<vmem>>, %arg27: memref<24x128xf32, #tpu.memory_space<vmem>>, %arg28: memref<24x32xf32, #tpu.memory_space<vmem>>) attributes {dimension_semantics = [#tpu.dimension_semantics<arbitrary>], iteration_bounds = array<i64: 2>, scalar_prefetch = 0 : i64, scratch_operands = 1 : i64, tpu.core_type = #tpu.core_type<tc>, window_params = [{pipeline_mode = #tpu.pipeline_mode<synchronous>, transform_indices = @transform_0, window_bounds = array<i64: 8, 192>}, {pipeline_mode = #tpu.pipeline_mode<synchronous>, transform_indices = @transform_1, window_bounds = array<i64: 16, 32>}, {pipeline_mode = #tpu.pipeline_mode<synchronous>, transform_indices = @transform_2, window_bounds = array<i64: 8, 32>}, {pipeline_mode = #tpu.pipeline_mode<synchronous>, transform_indices = @transform_3, window_bounds = array<i64: 24, 24>}, {pipeline_mode = #tpu.pipeline_mode<synchronous>, transform_indices = @transform_4, window_bounds = array<i64: 1, 192>}, {pipeline_mode = #tpu.pipeline_mode<synchronous>, transform_indices = @transform_5, window_bounds = array<i64: 1, 192>}, {pipeline_mode = #tpu.pipeline_mode<synchronous>, transform_indices = @transform_6, window_bounds = array<i64: 192, 32>}, {pipeline_mode = #tpu.pipeline_mode<synchronous>, transform_indices = @transform_7, window_bounds = array<i64: 1, 32>}, {pipeline_mode = #tpu.pipeline_mode<synchronous>, transform_indices = @transform_8, window_bounds = array<i64: 1, 32>}, {pipeline_mode = #tpu.pipeline_mode<synchronous>, transform_indices = @transform_9, window_bounds = array<i64: 1, 32>}, {transform_indices = @transform_10, window_bounds = array<i64: 1, 1, 32>}, {transform_indices = @transform_11, window_bounds = array<i64: 1, 1, 32>}, {transform_indices = @transform_12, window_bounds = array<i64: 1, 32, 96>}, {transform_indices = @transform_13, window_bounds = array<i64: 1, 1, 96>}, {transform_indices = @transform_14, window_bounds = array<i64: 1, 32, 32>}, {transform_indices = @transform_15, window_bounds = array<i64: 1, 1, 32>}, {transform_indices = @transform_16, window_bounds = array<i64: 1, 1, 32>}, {transform_indices = @transform_17, window_bounds = array<i64: 1, 1, 32>}, {transform_indices = @transform_18, window_bounds = array<i64: 1, 4, 32, 512>}, {transform_indices = @transform_19, window_bounds = array<i64: 1, 4, 1, 512>}, {transform_indices = @transform_20, window_bounds = array<i64: 1, 4, 512, 32>}, {transform_indices = @transform_21, window_bounds = array<i64: 1, 1, 32>}, {pipeline_mode = #tpu.pipeline_mode<synchronous>, transform_indices = @transform_22, window_bounds = array<i64: 1, 32>}, {pipeline_mode = #tpu.pipeline_mode<synchronous>, transform_indices = @transform_23, window_bounds = array<i64: 1, 32>}, {pipeline_mode = #tpu.pipeline_mode<synchronous>, transform_indices = @transform_24, window_bounds = array<i64: 32, 128>}, {pipeline_mode = #tpu.pipeline_mode<synchronous>, transform_indices = @transform_25, window_bounds = array<i64: 1, 128>}, {pipeline_mode = #tpu.pipeline_mode<synchronous>, transform_indices = @transform_26, window_bounds = array<i64: 24, 128>}]} {
    %c0_i32 = arith.constant 0 : i32
    %0 = arith.cmpi eq, %arg0, %c0_i32 : i32
    %1 = arith.extui %0 : i1 to i32
    %c0_i32_0 = arith.constant 0 : i32
    %2 = arith.cmpi ne, %1, %c0_i32_0 : i32
    scf.if %2 {
      %c0_69 = arith.constant 0 : index
      %c0_70 = arith.constant 0 : index
      %154 = vector.load %arg1[%c0_69, %c0_70] : memref<8x192xf32, #tpu.memory_space<vmem>>, vector<8x192xf32>
      %c0_71 = arith.constant 0 : index
      %c0_72 = arith.constant 0 : index
      %155 = vector.load %arg5[%c0_71, %c0_72] : memref<1x192xf32, #tpu.memory_space<vmem>>, vector<1x192xf32>
      %c0_73 = arith.constant 0 : index
      %c0_74 = arith.constant 0 : index
      %156 = vector.load %arg6[%c0_73, %c0_74] : memref<1x192xf32, #tpu.memory_space<vmem>>, vector<1x192xf32>
      %cst_75 = arith.constant dense<0.000000e+00> : vector<8xf32>
      %157 = vector.multi_reduction <add>, %154, %cst_75 [1] : vector<8x192xf32> to vector<8xf32>
      %158 = vector.shape_cast %157 : vector<8xf32> to vector<8x1xf32>
      %cst_76 = arith.constant 1.920000e+02 : f32
      %159 = vector.broadcast %cst_76 : f32 to vector<8x1xf32>
      %160 = arith.divf %158, %159 : vector<8x1xf32>
      %161 = vector.broadcast %160 : vector<8x1xf32> to vector<8x192xf32>
      %162 = arith.subf %154, %161 : vector<8x192xf32>
      %163 = arith.mulf %162, %162 : vector<8x192xf32>
      %cst_77 = arith.constant dense<0.000000e+00> : vector<8xf32>
      %164 = vector.multi_reduction <add>, %163, %cst_77 [1] : vector<8x192xf32> to vector<8xf32>
      %165 = vector.shape_cast %164 : vector<8xf32> to vector<8x1xf32>
      %cst_78 = arith.constant 1.920000e+02 : f32
      %166 = vector.broadcast %cst_78 : f32 to vector<8x1xf32>
      %167 = arith.divf %165, %166 : vector<8x1xf32>
      %cst_79 = arith.constant 9.99999974E-6 : f32
      %168 = vector.broadcast %cst_79 : f32 to vector<8x1xf32>
      %169 = arith.addf %167, %168 : vector<8x1xf32>
      %170 = math.rsqrt %169 : vector<8x1xf32>
      %171 = vector.broadcast %170 : vector<8x1xf32> to vector<8x192xf32>
      %172 = arith.mulf %162, %171 : vector<8x192xf32>
      %173 = vector.broadcast %155 : vector<1x192xf32> to vector<8x192xf32>
      %174 = arith.mulf %172, %173 : vector<8x192xf32>
      %175 = vector.broadcast %156 : vector<1x192xf32> to vector<8x192xf32>
      %176 = arith.addf %174, %175 : vector<8x192xf32>
      %c0_80 = arith.constant 0 : index
      %c0_81 = arith.constant 0 : index
      %177 = vector.load %arg7[%c0_80, %c0_81] : memref<192x32xf32, #tpu.memory_space<vmem>>, vector<192x32xf32>
      %cst_82 = arith.constant dense<0.000000e+00> : vector<8x32xf32>
      %178 = tpu.matmul %176, %177, %cst_82 {dimension_numbers = #tpu.dot_dimension_numbers<[1], [0], [0], [1], [0, 0, 1, 1], [], []>} : vector<8x192xf32>, vector<192x32xf32>, vector<8x32xf32> -> vector<8x32xf32>
      %c0_83 = arith.constant 0 : index
      %c0_84 = arith.constant 0 : index
      %179 = vector.load %arg8[%c0_83, %c0_84] : memref<1x32xf32, #tpu.memory_space<vmem>>, vector<1x32xf32>
      %180 = vector.broadcast %179 : vector<1x32xf32> to vector<8x32xf32>
      %181 = arith.addf %178, %180 : vector<8x32xf32>
      %c0_85 = arith.constant 0 : index
      %c0_86 = arith.constant 0 : index
      %182 = vector.load %arg9[%c0_85, %c0_86] : memref<1x32xf32, #tpu.memory_space<vmem>>, vector<1x32xf32>
      %c0_87 = arith.constant 0 : index
      %c0_88 = arith.constant 0 : index
      %183 = vector.load %arg10[%c0_87, %c0_88] : memref<1x32xf32, #tpu.memory_space<vmem>>, vector<1x32xf32>
      %cst_89 = arith.constant dense<0.000000e+00> : vector<8xf32>
      %184 = vector.multi_reduction <add>, %181, %cst_89 [1] : vector<8x32xf32> to vector<8xf32>
      %185 = vector.shape_cast %184 : vector<8xf32> to vector<8x1xf32>
      %cst_90 = arith.constant 3.200000e+01 : f32
      %186 = vector.broadcast %cst_90 : f32 to vector<8x1xf32>
      %187 = arith.divf %185, %186 : vector<8x1xf32>
      %188 = vector.broadcast %187 : vector<8x1xf32> to vector<8x32xf32>
      %189 = arith.subf %181, %188 : vector<8x32xf32>
      %190 = arith.mulf %189, %189 : vector<8x32xf32>
      %cst_91 = arith.constant dense<0.000000e+00> : vector<8xf32>
      %191 = vector.multi_reduction <add>, %190, %cst_91 [1] : vector<8x32xf32> to vector<8xf32>
      %192 = vector.shape_cast %191 : vector<8xf32> to vector<8x1xf32>
      %cst_92 = arith.constant 3.200000e+01 : f32
      %193 = vector.broadcast %cst_92 : f32 to vector<8x1xf32>
      %194 = arith.divf %192, %193 : vector<8x1xf32>
      %cst_93 = arith.constant 9.99999974E-6 : f32
      %195 = vector.broadcast %cst_93 : f32 to vector<8x1xf32>
      %196 = arith.addf %194, %195 : vector<8x1xf32>
      %197 = math.rsqrt %196 : vector<8x1xf32>
      %198 = vector.broadcast %197 : vector<8x1xf32> to vector<8x32xf32>
      %199 = arith.mulf %189, %198 : vector<8x32xf32>
      %200 = vector.broadcast %182 : vector<1x32xf32> to vector<8x32xf32>
      %201 = arith.mulf %199, %200 : vector<8x32xf32>
      %202 = vector.broadcast %183 : vector<1x32xf32> to vector<8x32xf32>
      %203 = arith.addf %201, %202 : vector<8x32xf32>
      %c0_94 = arith.constant 0 : index
      %c0_95 = arith.constant 0 : index
      %204 = vector.load %arg3[%c0_94, %c0_95] : memref<8x32xf32, #tpu.memory_space<vmem>>, vector<8x32xf32>
      %205 = arith.addf %203, %204 : vector<8x32xf32>
      %c0_96 = arith.constant 0 : index
      %c0_97 = arith.constant 0 : index
      %206 = vector.load %arg28[%c0_96, %c0_97] : memref<24x32xf32, #tpu.memory_space<vmem>>, vector<8x32xf32>
      tpu.vector_store %arg28[%c0_96, %c0_97], %205 {strides = array<i32>} : memref<24x32xf32, #tpu.memory_space<vmem>>, vector<8x32xf32>,
      %c0_98 = arith.constant 0 : index
      %c0_99 = arith.constant 0 : index
      %207 = vector.load %arg2[%c0_98, %c0_99] : memref<16x32xf32, #tpu.memory_space<vmem>>, vector<16x32xf32>
      %c8 = arith.constant 8 : index
      %c0_100 = arith.constant 0 : index
      %208 = vector.load %arg28[%c8, %c0_100] : memref<24x32xf32, #tpu.memory_space<vmem>>, vector<16x32xf32>
      tpu.vector_store %arg28[%c8, %c0_100], %207 {strides = array<i32>} : memref<24x32xf32, #tpu.memory_space<vmem>>, vector<16x32xf32>,
    } else {
    }
    %c0 = arith.constant 0 : index
    %c0_1 = arith.constant 0 : index
    %3 = vector.load %arg28[%c0, %c0_1] : memref<24x32xf32, #tpu.memory_space<vmem>>, vector<24x32xf32>
    %c0_2 = arith.constant 0 : index
    %c0_3 = arith.constant 0 : index
    %4 = vector.load %arg4[%c0_2, %c0_3] : memref<24x24xf32, #tpu.memory_space<vmem>>, vector<24x24xf32>
    %c0_4 = arith.constant 0 : index
    %c0_5 = arith.constant 0 : index
    %c0_6 = arith.constant 0 : index
    %5 = vector.load %arg11[%c0_4, %c0_5, %c0_6] : memref<1x1x32xf32, #tpu.memory_space<vmem>>, vector<1x1x32xf32>
    %6 = vector.shape_cast %5 : vector<1x1x32xf32> to vector<1x32xf32>
    %c0_7 = arith.constant 0 : index
    %c0_8 = arith.constant 0 : index
    %c0_9 = arith.constant 0 : index
    %7 = vector.load %arg12[%c0_7, %c0_8, %c0_9] : memref<1x1x32xf32, #tpu.memory_space<vmem>>, vector<1x1x32xf32>
    %8 = vector.shape_cast %7 : vector<1x1x32xf32> to vector<1x32xf32>
    %cst = arith.constant dense<0.000000e+00> : vector<24xf32>
    %9 = vector.multi_reduction <add>, %3, %cst [1] : vector<24x32xf32> to vector<24xf32>
    %10 = vector.shape_cast %9 : vector<24xf32> to vector<24x1xf32>
    %cst_10 = arith.constant 3.200000e+01 : f32
    %11 = vector.broadcast %cst_10 : f32 to vector<24x1xf32>
    %12 = arith.divf %10, %11 : vector<24x1xf32>
    %13 = vector.broadcast %12 : vector<24x1xf32> to vector<24x32xf32>
    %14 = arith.subf %3, %13 : vector<24x32xf32>
    %15 = arith.mulf %14, %14 : vector<24x32xf32>
    %cst_11 = arith.constant dense<0.000000e+00> : vector<24xf32>
    %16 = vector.multi_reduction <add>, %15, %cst_11 [1] : vector<24x32xf32> to vector<24xf32>
    %17 = vector.shape_cast %16 : vector<24xf32> to vector<24x1xf32>
    %cst_12 = arith.constant 3.200000e+01 : f32
    %18 = vector.broadcast %cst_12 : f32 to vector<24x1xf32>
    %19 = arith.divf %17, %18 : vector<24x1xf32>
    %cst_13 = arith.constant 9.99999974E-6 : f32
    %20 = vector.broadcast %cst_13 : f32 to vector<24x1xf32>
    %21 = arith.addf %19, %20 : vector<24x1xf32>
    %22 = math.rsqrt %21 : vector<24x1xf32>
    %23 = vector.broadcast %22 : vector<24x1xf32> to vector<24x32xf32>
    %24 = arith.mulf %14, %23 : vector<24x32xf32>
    %25 = vector.broadcast %6 : vector<1x32xf32> to vector<24x32xf32>
    %26 = arith.mulf %24, %25 : vector<24x32xf32>
    %27 = vector.broadcast %8 : vector<1x32xf32> to vector<24x32xf32>
    %28 = arith.addf %26, %27 : vector<24x32xf32>
    %c0_14 = arith.constant 0 : index
    %c0_15 = arith.constant 0 : index
    %c0_16 = arith.constant 0 : index
    %29 = vector.load %arg13[%c0_14, %c0_15, %c0_16] : memref<1x32x96xf32, #tpu.memory_space<vmem>>, vector<1x32x96xf32>
    %30 = vector.shape_cast %29 : vector<1x32x96xf32> to vector<32x96xf32>
    %cst_17 = arith.constant dense<0.000000e+00> : vector<24x96xf32>
    %31 = tpu.matmul %28, %30, %cst_17 {dimension_numbers = #tpu.dot_dimension_numbers<[1], [0], [0], [1], [0, 0, 1, 1], [], []>} : vector<24x32xf32>, vector<32x96xf32>, vector<24x96xf32> -> vector<24x96xf32>
    %c0_18 = arith.constant 0 : index
    %c0_19 = arith.constant 0 : index
    %c0_20 = arith.constant 0 : index
    %32 = vector.load %arg14[%c0_18, %c0_19, %c0_20] : memref<1x1x96xf32, #tpu.memory_space<vmem>>, vector<1x1x96xf32>
    %33 = vector.shape_cast %32 : vector<1x1x96xf32> to vector<1x96xf32>
    %34 = vector.broadcast %33 : vector<1x96xf32> to vector<24x96xf32>
    %35 = arith.addf %31, %34 : vector<24x96xf32>
    %36 = vector.extract_strided_slice %35 {offsets = [0, 0], sizes = [24, 8], strides = [1, 1]} : vector<24x96xf32> to vector<24x8xf32>
    %37 = vector.extract_strided_slice %35 {offsets = [0, 32], sizes = [24, 8], strides = [1, 1]} : vector<24x96xf32> to vector<24x8xf32>
    %38 = vector.extract_strided_slice %35 {offsets = [0, 64], sizes = [24, 8], strides = [1, 1]} : vector<24x96xf32> to vector<24x8xf32>
    %cst_21 = arith.constant dense<0.000000e+00> : vector<24x24xf32>
    %39 = tpu.matmul %36, %37, %cst_21 {dimension_numbers = #tpu.dot_dimension_numbers<[1], [1], [0], [0], [0, 0, 1, 0], [], []>} : vector<24x8xf32>, vector<24x8xf32>, vector<24x24xf32> -> vector<24x24xf32>
    %cst_22 = arith.constant 0.353553385 : f32
    %40 = vector.broadcast %cst_22 : f32 to vector<24x24xf32>
    %41 = arith.mulf %39, %40 : vector<24x24xf32>
    %42 = arith.addf %41, %4 : vector<24x24xf32>
    %cst_23 = arith.constant dense<0xFF800000> : vector<24xf32>
    %43 = vector.multi_reduction <maximumf>, %42, %cst_23 [1] : vector<24x24xf32> to vector<24xf32>
    %44 = vector.shape_cast %43 : vector<24xf32> to vector<24x1xf32>
    %45 = vector.broadcast %44 : vector<24x1xf32> to vector<24x24xf32>
    %46 = arith.subf %42, %45 : vector<24x24xf32>
    %47 = math.exp %46 : vector<24x24xf32>
    %cst_24 = arith.constant dense<0.000000e+00> : vector<24xf32>
    %48 = vector.multi_reduction <add>, %47, %cst_24 [1] : vector<24x24xf32> to vector<24xf32>
    %49 = vector.shape_cast %48 : vector<24xf32> to vector<24x1xf32>
    %50 = tpu.reciprocal %49 {approx = true} : vector<24x1xf32> -> vector<24x1xf32>
    %51 = vector.broadcast %50 : vector<24x1xf32> to vector<24x24xf32>
    %52 = arith.mulf %47, %51 : vector<24x24xf32>
    %cst_25 = arith.constant dense<0.000000e+00> : vector<24x8xf32>
    %53 = tpu.matmul %52, %38, %cst_25 {dimension_numbers = #tpu.dot_dimension_numbers<[1], [0], [0], [1], [0, 0, 1, 1], [], []>} : vector<24x24xf32>, vector<24x8xf32>, vector<24x8xf32> -> vector<24x8xf32>
    %54 = vector.extract_strided_slice %35 {offsets = [0, 8], sizes = [24, 8], strides = [1, 1]} : vector<24x96xf32> to vector<24x8xf32>
    %55 = vector.extract_strided_slice %35 {offsets = [0, 40], sizes = [24, 8], strides = [1, 1]} : vector<24x96xf32> to vector<24x8xf32>
    %56 = vector.extract_strided_slice %35 {offsets = [0, 72], sizes = [24, 8], strides = [1, 1]} : vector<24x96xf32> to vector<24x8xf32>
    %cst_26 = arith.constant dense<0.000000e+00> : vector<24x24xf32>
    %57 = tpu.matmul %54, %55, %cst_26 {dimension_numbers = #tpu.dot_dimension_numbers<[1], [1], [0], [0], [0, 0, 1, 0], [], []>} : vector<24x8xf32>, vector<24x8xf32>, vector<24x24xf32> -> vector<24x24xf32>
    %cst_27 = arith.constant 0.353553385 : f32
    %58 = vector.broadcast %cst_27 : f32 to vector<24x24xf32>
    %59 = arith.mulf %57, %58 : vector<24x24xf32>
    %60 = arith.addf %59, %4 : vector<24x24xf32>
    %cst_28 = arith.constant dense<0xFF800000> : vector<24xf32>
    %61 = vector.multi_reduction <maximumf>, %60, %cst_28 [1] : vector<24x24xf32> to vector<24xf32>
    %62 = vector.shape_cast %61 : vector<24xf32> to vector<24x1xf32>
    %63 = vector.broadcast %62 : vector<24x1xf32> to vector<24x24xf32>
    %64 = arith.subf %60, %63 : vector<24x24xf32>
    %65 = math.exp %64 : vector<24x24xf32>
    %cst_29 = arith.constant dense<0.000000e+00> : vector<24xf32>
    %66 = vector.multi_reduction <add>, %65, %cst_29 [1] : vector<24x24xf32> to vector<24xf32>
    %67 = vector.shape_cast %66 : vector<24xf32> to vector<24x1xf32>
    %68 = tpu.reciprocal %67 {approx = true} : vector<24x1xf32> -> vector<24x1xf32>
    %69 = vector.broadcast %68 : vector<24x1xf32> to vector<24x24xf32>
    %70 = arith.mulf %65, %69 : vector<24x24xf32>
    %cst_30 = arith.constant dense<0.000000e+00> : vector<24x8xf32>
    %71 = tpu.matmul %70, %56, %cst_30 {dimension_numbers = #tpu.dot_dimension_numbers<[1], [0], [0], [1], [0, 0, 1, 1], [], []>} : vector<24x24xf32>, vector<24x8xf32>, vector<24x8xf32> -> vector<24x8xf32>
    %72 = vector.extract_strided_slice %35 {offsets = [0, 16], sizes = [24, 8], strides = [1, 1]} : vector<24x96xf32> to vector<24x8xf32>
    %73 = vector.extract_strided_slice %35 {offsets = [0, 48], sizes = [24, 8], strides = [1, 1]} : vector<24x96xf32> to vector<24x8xf32>
    %74 = vector.extract_strided_slice %35 {offsets = [0, 80], sizes = [24, 8], strides = [1, 1]} : vector<24x96xf32> to vector<24x8xf32>
    %cst_31 = arith.constant dense<0.000000e+00> : vector<24x24xf32>
    %75 = tpu.matmul %72, %73, %cst_31 {dimension_numbers = #tpu.dot_dimension_numbers<[1], [1], [0], [0], [0, 0, 1, 0], [], []>} : vector<24x8xf32>, vector<24x8xf32>, vector<24x24xf32> -> vector<24x24xf32>
    %cst_32 = arith.constant 0.353553385 : f32
    %76 = vector.broadcast %cst_32 : f32 to vector<24x24xf32>
    %77 = arith.mulf %75, %76 : vector<24x24xf32>
    %78 = arith.addf %77, %4 : vector<24x24xf32>
    %cst_33 = arith.constant dense<0xFF800000> : vector<24xf32>
    %79 = vector.multi_reduction <maximumf>, %78, %cst_33 [1] : vector<24x24xf32> to vector<24xf32>
    %80 = vector.shape_cast %79 : vector<24xf32> to vector<24x1xf32>
    %81 = vector.broadcast %80 : vector<24x1xf32> to vector<24x24xf32>
    %82 = arith.subf %78, %81 : vector<24x24xf32>
    %83 = math.exp %82 : vector<24x24xf32>
    %cst_34 = arith.constant dense<0.000000e+00> : vector<24xf32>
    %84 = vector.multi_reduction <add>, %83, %cst_34 [1] : vector<24x24xf32> to vector<24xf32>
    %85 = vector.shape_cast %84 : vector<24xf32> to vector<24x1xf32>
    %86 = tpu.reciprocal %85 {approx = true} : vector<24x1xf32> -> vector<24x1xf32>
    %87 = vector.broadcast %86 : vector<24x1xf32> to vector<24x24xf32>
    %88 = arith.mulf %83, %87 : vector<24x24xf32>
    %cst_35 = arith.constant dense<0.000000e+00> : vector<24x8xf32>
    %89 = tpu.matmul %88, %74, %cst_35 {dimension_numbers = #tpu.dot_dimension_numbers<[1], [0], [0], [1], [0, 0, 1, 1], [], []>} : vector<24x24xf32>, vector<24x8xf32>, vector<24x8xf32> -> vector<24x8xf32>
    %90 = vector.extract_strided_slice %35 {offsets = [0, 24], sizes = [24, 8], strides = [1, 1]} : vector<24x96xf32> to vector<24x8xf32>
    %91 = vector.extract_strided_slice %35 {offsets = [0, 56], sizes = [24, 8], strides = [1, 1]} : vector<24x96xf32> to vector<24x8xf32>
    %92 = vector.extract_strided_slice %35 {offsets = [0, 88], sizes = [24, 8], strides = [1, 1]} : vector<24x96xf32> to vector<24x8xf32>
    %cst_36 = arith.constant dense<0.000000e+00> : vector<24x24xf32>
    %93 = tpu.matmul %90, %91, %cst_36 {dimension_numbers = #tpu.dot_dimension_numbers<[1], [1], [0], [0], [0, 0, 1, 0], [], []>} : vector<24x8xf32>, vector<24x8xf32>, vector<24x24xf32> -> vector<24x24xf32>
    %cst_37 = arith.constant 0.353553385 : f32
    %94 = vector.broadcast %cst_37 : f32 to vector<24x24xf32>
    %95 = arith.mulf %93, %94 : vector<24x24xf32>
    %96 = arith.addf %95, %4 : vector<24x24xf32>
    %cst_38 = arith.constant dense<0xFF800000> : vector<24xf32>
    %97 = vector.multi_reduction <maximumf>, %96, %cst_38 [1] : vector<24x24xf32> to vector<24xf32>
    %98 = vector.shape_cast %97 : vector<24xf32> to vector<24x1xf32>
    %99 = vector.broadcast %98 : vector<24x1xf32> to vector<24x24xf32>
    %100 = arith.subf %96, %99 : vector<24x24xf32>
    %101 = math.exp %100 : vector<24x24xf32>
    %cst_39 = arith.constant dense<0.000000e+00> : vector<24xf32>
    %102 = vector.multi_reduction <add>, %101, %cst_39 [1] : vector<24x24xf32> to vector<24xf32>
    %103 = vector.shape_cast %102 : vector<24xf32> to vector<24x1xf32>
    %104 = tpu.reciprocal %103 {approx = true} : vector<24x1xf32> -> vector<24x1xf32>
    %105 = vector.broadcast %104 : vector<24x1xf32> to vector<24x24xf32>
    %106 = arith.mulf %101, %105 : vector<24x24xf32>
    %cst_40 = arith.constant dense<0.000000e+00> : vector<24x8xf32>
    %107 = tpu.matmul %106, %92, %cst_40 {dimension_numbers = #tpu.dot_dimension_numbers<[1], [0], [0], [1], [0, 0, 1, 1], [], []>} : vector<24x24xf32>, vector<24x8xf32>, vector<24x8xf32> -> vector<24x8xf32>
    %108 = tpu.concatenate %53, %71, %89, %107 in 1 : vector<24x8xf32>, vector<24x8xf32>, vector<24x8xf32>, vector<24x8xf32> -> vector<24x32xf32>
    %c0_41 = arith.constant 0 : index
    %c0_42 = arith.constant 0 : index
    %c0_43 = arith.constant 0 : index
    %109 = vector.load %arg15[%c0_41, %c0_42, %c0_43] : memref<1x32x32xf32, #tpu.memory_space<vmem>>, vector<1x32x32xf32>
    %110 = vector.shape_cast %109 : vector<1x32x32xf32> to vector<32x32xf32>
    %cst_44 = arith.constant dense<0.000000e+00> : vector<24x32xf32>
    %111 = tpu.matmul %108, %110, %cst_44 {dimension_numbers = #tpu.dot_dimension_numbers<[1], [0], [0], [1], [0, 0, 1, 1], [], []>} : vector<24x32xf32>, vector<32x32xf32>, vector<24x32xf32> -> vector<24x32xf32>
    %112 = arith.addf %3, %111 : vector<24x32xf32>
    %c0_45 = arith.constant 0 : index
    %c0_46 = arith.constant 0 : index
    %c0_47 = arith.constant 0 : index
    %113 = vector.load %arg16[%c0_45, %c0_46, %c0_47] : memref<1x1x32xf32, #tpu.memory_space<vmem>>, vector<1x1x32xf32>
    %114 = vector.shape_cast %113 : vector<1x1x32xf32> to vector<1x32xf32>
    %115 = vector.broadcast %114 : vector<1x32xf32> to vector<24x32xf32>
    %116 = arith.addf %112, %115 : vector<24x32xf32>
    %c0_48 = arith.constant 0 : index
    %c0_49 = arith.constant 0 : index
    %c0_50 = arith.constant 0 : index
    %117 = vector.load %arg17[%c0_48, %c0_49, %c0_50] : memref<1x1x32xf32, #tpu.memory_space<vmem>>, vector<1x1x32xf32>
    %118 = vector.shape_cast %117 : vector<1x1x32xf32> to vector<1x32xf32>
    %c0_51 = arith.constant 0 : index
    %c0_52 = arith.constant 0 : index
    %c0_53 = arith.constant 0 : index
    %119 = vector.load %arg18[%c0_51, %c0_52, %c0_53] : memref<1x1x32xf32, #tpu.memory_space<vmem>>, vector<1x1x32xf32>
    %120 = vector.shape_cast %119 : vector<1x1x32xf32> to vector<1x32xf32>
    %cst_54 = arith.constant dense<0.000000e+00> : vector<24xf32>
    %121 = vector.multi_reduction <add>, %116, %cst_54 [1] : vector<24x32xf32> to vector<24xf32>
    %122 = vector.shape_cast %121 : vector<24xf32> to vector<24x1xf32>
    %cst_55 = arith.constant 3.200000e+01 : f32
    %123 = vector.broadcast %cst_55 : f32 to vector<24x1xf32>
    %124 = arith.divf %122, %123 : vector<24x1xf32>
    %125 = vector.broadcast %124 : vector<24x1xf32> to vector<24x32xf32>
    %126 = arith.subf %116, %125 : vector<24x32xf32>
    %127 = arith.mulf %126, %126 : vector<24x32xf32>
    %cst_56 = arith.constant dense<0.000000e+00> : vector<24xf32>
    %128 = vector.multi_reduction <add>, %127, %cst_56 [1] : vector<24x32xf32> to vector<24xf32>
    %129 = vector.shape_cast %128 : vector<24xf32> to vector<24x1xf32>
    %cst_57 = arith.constant 3.200000e+01 : f32
    %130 = vector.broadcast %cst_57 : f32 to vector<24x1xf32>
    %131 = arith.divf %129, %130 : vector<24x1xf32>
    %cst_58 = arith.constant 9.99999974E-6 : f32
    %132 = vector.broadcast %cst_58 : f32 to vector<24x1xf32>
    %133 = arith.addf %131, %132 : vector<24x1xf32>
    %134 = math.rsqrt %133 : vector<24x1xf32>
    %135 = vector.broadcast %134 : vector<24x1xf32> to vector<24x32xf32>
    %136 = arith.mulf %126, %135 : vector<24x32xf32>
    %137 = vector.broadcast %118 : vector<1x32xf32> to vector<24x32xf32>
    %138 = arith.mulf %136, %137 : vector<24x32xf32>
    %139 = vector.broadcast %120 : vector<1x32xf32> to vector<24x32xf32>
    %140 = arith.addf %138, %139 : vector<24x32xf32>
    %141 = arith.truncf %140 : vector<24x32xf32> to vector<24x32xbf16>
    %cst_59 = arith.constant 0.000000e+00 : f32
    %142 = vector.broadcast %cst_59 : f32 to vector<24x32xf32>
    %c0_i32_60 = arith.constant 0 : i32
    %c4_i32 = arith.constant 4 : i32
    %143 = arith.addi %c0_i32_60, %c4_i32 : i32
    %c1_i32 = arith.constant 1 : i32
    %144 = scf.for %arg29 = %c0_i32_60 to %143 step %c1_i32 iter_args(%arg30 = %142) -> (vector<24x32xf32>)  : i32 {
      %c0_69 = arith.constant 0 : index
      %154 = arith.index_cast %arg29 : i32 to index
      %c0_70 = arith.constant 0 : index
      %c0_71 = arith.constant 0 : index
      %155 = vector.load %arg19[%c0_69, %154, %c0_70, %c0_71] : memref<1x4x32x512xbf16, #tpu.memory_space<vmem>>, vector<1x1x32x512xbf16>
      %156 = vector.shape_cast %155 : vector<1x1x32x512xbf16> to vector<32x512xbf16>
      %cst_72 = arith.constant dense<0.000000e+00> : vector<24x512xf32>
      %157 = tpu.matmul %141, %156, %cst_72 {dimension_numbers = #tpu.dot_dimension_numbers<[1], [0], [0], [1], [0, 0, 1, 1], [], []>} : vector<24x32xbf16>, vector<32x512xbf16>, vector<24x512xf32> -> vector<24x512xf32>
      %c0_73 = arith.constant 0 : index
      %158 = arith.index_cast %arg29 : i32 to index
      %c0_74 = arith.constant 0 : index
      %c0_75 = arith.constant 0 : index
      %159 = vector.load %arg20[%c0_73, %158, %c0_74, %c0_75] : memref<1x4x1x512xf32, #tpu.memory_space<vmem>>, vector<1x1x1x512xf32>
      %160 = vector.shape_cast %159 : vector<1x1x1x512xf32> to vector<1x512xf32>
      %161 = vector.broadcast %160 : vector<1x512xf32> to vector<24x512xf32>
      %162 = arith.addf %157, %161 : vector<24x512xf32>
      %cst_76 = arith.constant 0.000000e+00 : f32
      %163 = vector.broadcast %cst_76 : f32 to vector<24x512xf32>
      %164 = arith.maximumf %162, %163 : vector<24x512xf32>
      %165 = arith.truncf %164 : vector<24x512xf32> to vector<24x512xbf16>
      %c0_77 = arith.constant 0 : index
      %166 = arith.index_cast %arg29 : i32 to index
      %c0_78 = arith.constant 0 : index
      %c0_79 = arith.constant 0 : index
      %167 = vector.load %arg21[%c0_77, %166, %c0_78, %c0_79] : memref<1x4x512x32xbf16, #tpu.memory_space<vmem>>, vector<1x1x512x32xbf16>
      %168 = vector.shape_cast %167 : vector<1x1x512x32xbf16> to vector<512x32xbf16>
      %cst_80 = arith.constant dense<0.000000e+00> : vector<24x32xf32>
      %169 = tpu.matmul %165, %168, %cst_80 {dimension_numbers = #tpu.dot_dimension_numbers<[1], [0], [0], [1], [0, 0, 1, 1], [], []>} : vector<24x512xbf16>, vector<512x32xbf16>, vector<24x32xf32> -> vector<24x32xf32>
      %170 = arith.addf %arg30, %169 : vector<24x32xf32>
      scf.yield %170 : vector<24x32xf32>
    }
    %c4_i32_61 = arith.constant 4 : i32
    %145 = arith.addf %116, %144 : vector<24x32xf32>
    %c0_62 = arith.constant 0 : index
    %c0_63 = arith.constant 0 : index
    %c0_64 = arith.constant 0 : index
    %146 = vector.load %arg22[%c0_62, %c0_63, %c0_64] : memref<1x1x32xf32, #tpu.memory_space<vmem>>, vector<1x1x32xf32>
    %147 = vector.shape_cast %146 : vector<1x1x32xf32> to vector<1x32xf32>
    %148 = vector.broadcast %147 : vector<1x32xf32> to vector<24x32xf32>
    %149 = arith.addf %145, %148 : vector<24x32xf32>
    %c0_65 = arith.constant 0 : index
    %c0_66 = arith.constant 0 : index
    %150 = vector.load %arg28[%c0_65, %c0_66] : memref<24x32xf32, #tpu.memory_space<vmem>>, vector<24x32xf32>
    tpu.vector_store %arg28[%c0_65, %c0_66], %149 {strides = array<i32>} : memref<24x32xf32, #tpu.memory_space<vmem>>, vector<24x32xf32>,
    %c1_i32_67 = arith.constant 1 : i32
    %151 = arith.cmpi eq, %arg0, %c1_i32_67 : i32
    %152 = arith.extui %151 : i1 to i32
    %c0_i32_68 = arith.constant 0 : i32
    %153 = arith.cmpi ne, %152, %c0_i32_68 : i32
    scf.if %153 {
      %c0_69 = arith.constant 0 : index
      %c0_70 = arith.constant 0 : index
      %154 = vector.load %arg23[%c0_69, %c0_70] : memref<1x32xf32, #tpu.memory_space<vmem>>, vector<1x32xf32>
      %c0_71 = arith.constant 0 : index
      %c0_72 = arith.constant 0 : index
      %155 = vector.load %arg24[%c0_71, %c0_72] : memref<1x32xf32, #tpu.memory_space<vmem>>, vector<1x32xf32>
      %cst_73 = arith.constant dense<0.000000e+00> : vector<24xf32>
      %156 = vector.multi_reduction <add>, %149, %cst_73 [1] : vector<24x32xf32> to vector<24xf32>
      %157 = vector.shape_cast %156 : vector<24xf32> to vector<24x1xf32>
      %cst_74 = arith.constant 3.200000e+01 : f32
      %158 = vector.broadcast %cst_74 : f32 to vector<24x1xf32>
      %159 = arith.divf %157, %158 : vector<24x1xf32>
      %160 = vector.broadcast %159 : vector<24x1xf32> to vector<24x32xf32>
      %161 = arith.subf %149, %160 : vector<24x32xf32>
      %162 = arith.mulf %161, %161 : vector<24x32xf32>
      %cst_75 = arith.constant dense<0.000000e+00> : vector<24xf32>
      %163 = vector.multi_reduction <add>, %162, %cst_75 [1] : vector<24x32xf32> to vector<24xf32>
      %164 = vector.shape_cast %163 : vector<24xf32> to vector<24x1xf32>
      %cst_76 = arith.constant 3.200000e+01 : f32
      %165 = vector.broadcast %cst_76 : f32 to vector<24x1xf32>
      %166 = arith.divf %164, %165 : vector<24x1xf32>
      %cst_77 = arith.constant 9.99999974E-6 : f32
      %167 = vector.broadcast %cst_77 : f32 to vector<24x1xf32>
      %168 = arith.addf %166, %167 : vector<24x1xf32>
      %169 = math.rsqrt %168 : vector<24x1xf32>
      %170 = vector.broadcast %169 : vector<24x1xf32> to vector<24x32xf32>
      %171 = arith.mulf %161, %170 : vector<24x32xf32>
      %172 = vector.broadcast %154 : vector<1x32xf32> to vector<24x32xf32>
      %173 = arith.mulf %171, %172 : vector<24x32xf32>
      %174 = vector.broadcast %155 : vector<1x32xf32> to vector<24x32xf32>
      %175 = arith.addf %173, %174 : vector<24x32xf32>
      %c0_78 = arith.constant 0 : index
      %c0_79 = arith.constant 0 : index
      %176 = vector.load %arg25[%c0_78, %c0_79] : memref<32x128xf32, #tpu.memory_space<vmem>>, vector<32x128xf32>
      %cst_80 = arith.constant dense<0.000000e+00> : vector<24x128xf32>
      %177 = tpu.matmul %175, %176, %cst_80 {dimension_numbers = #tpu.dot_dimension_numbers<[1], [0], [0], [1], [0, 0, 1, 1], [], []>} : vector<24x32xf32>, vector<32x128xf32>, vector<24x128xf32> -> vector<24x128xf32>
      %c0_81 = arith.constant 0 : index
      %c0_82 = arith.constant 0 : index
      %178 = vector.load %arg26[%c0_81, %c0_82] : memref<1x128xf32, #tpu.memory_space<vmem>>, vector<1x128xf32>
      %179 = vector.broadcast %178 : vector<1x128xf32> to vector<24x128xf32>
      %180 = arith.addf %177, %179 : vector<24x128xf32>
      %c0_83 = arith.constant 0 : index
      %c0_84 = arith.constant 0 : index
      %181 = vector.load %arg27[%c0_83, %c0_84] : memref<24x128xf32, #tpu.memory_space<vmem>>, vector<24x128xf32>
      tpu.vector_store %arg27[%c0_83, %c0_84], %180 {strides = array<i32>} : memref<24x128xf32, #tpu.memory_space<vmem>>, vector<24x128xf32>,
    } else {
    }
    return
  }
  func.func @transform_0(%arg0: i32) -> (i32, i32) {
    %c0_i32 = arith.constant 0 : i32
    %c0_i32_0 = arith.constant 0 : i32
    %c0_i32_1 = arith.constant 0 : i32
    return %c0_i32, %c0_i32_0 : i32, i32
  }
  func.func @transform_1(%arg0: i32) -> (i32, i32) {
    %c0_i32 = arith.constant 0 : i32
    %c0_i32_0 = arith.constant 0 : i32
    %c0_i32_1 = arith.constant 0 : i32
    return %c0_i32, %c0_i32_0 : i32, i32
  }
  func.func @transform_2(%arg0: i32) -> (i32, i32) {
    %c0_i32 = arith.constant 0 : i32
    %c0_i32_0 = arith.constant 0 : i32
    %c0_i32_1 = arith.constant 0 : i32
    return %c0_i32, %c0_i32_0 : i32, i32
  }
  func.func @transform_3(%arg0: i32) -> (i32, i32) {
    %c0_i32 = arith.constant 0 : i32
    %c0_i32_0 = arith.constant 0 : i32
    %c0_i32_1 = arith.constant 0 : i32
    return %c0_i32, %c0_i32_0 : i32, i32
  }
  func.func @transform_4(%arg0: i32) -> (i32, i32) {
    %c0_i32 = arith.constant 0 : i32
    %c0_i32_0 = arith.constant 0 : i32
    %c0_i32_1 = arith.constant 0 : i32
    return %c0_i32, %c0_i32_0 : i32, i32
  }
  func.func @transform_5(%arg0: i32) -> (i32, i32) {
    %c0_i32 = arith.constant 0 : i32
    %c0_i32_0 = arith.constant 0 : i32
    %c0_i32_1 = arith.constant 0 : i32
    return %c0_i32, %c0_i32_0 : i32, i32
  }
  func.func @transform_6(%arg0: i32) -> (i32, i32) {
    %c0_i32 = arith.constant 0 : i32
    %c0_i32_0 = arith.constant 0 : i32
    %c0_i32_1 = arith.constant 0 : i32
    return %c0_i32, %c0_i32_0 : i32, i32
  }
  func.func @transform_7(%arg0: i32) -> (i32, i32) {
    %c0_i32 = arith.constant 0 : i32
    %c0_i32_0 = arith.constant 0 : i32
    %c0_i32_1 = arith.constant 0 : i32
    return %c0_i32, %c0_i32_0 : i32, i32
  }
  func.func @transform_8(%arg0: i32) -> (i32, i32) {
    %c0_i32 = arith.constant 0 : i32
    %c0_i32_0 = arith.constant 0 : i32
    %c0_i32_1 = arith.constant 0 : i32
    return %c0_i32, %c0_i32_0 : i32, i32
  }
  func.func @transform_9(%arg0: i32) -> (i32, i32) {
    %c0_i32 = arith.constant 0 : i32
    %c0_i32_0 = arith.constant 0 : i32
    %c0_i32_1 = arith.constant 0 : i32
    return %c0_i32, %c0_i32_0 : i32, i32
  }
  func.func @transform_10(%arg0: i32) -> (i32, i32, i32) {
    %c0_i32 = arith.constant 0 : i32
    %c0_i32_0 = arith.constant 0 : i32
    %c0_i32_1 = arith.constant 0 : i32
    return %arg0, %c0_i32, %c0_i32_0 : i32, i32, i32
  }
  func.func @transform_11(%arg0: i32) -> (i32, i32, i32) {
    %c0_i32 = arith.constant 0 : i32
    %c0_i32_0 = arith.constant 0 : i32
    %c0_i32_1 = arith.constant 0 : i32
    return %arg0, %c0_i32, %c0_i32_0 : i32, i32, i32
  }
  func.func @transform_12(%arg0: i32) -> (i32, i32, i32) {
    %c0_i32 = arith.constant 0 : i32
    %c0_i32_0 = arith.constant 0 : i32
    %c0_i32_1 = arith.constant 0 : i32
    return %arg0, %c0_i32, %c0_i32_0 : i32, i32, i32
  }
  func.func @transform_13(%arg0: i32) -> (i32, i32, i32) {
    %c0_i32 = arith.constant 0 : i32
    %c0_i32_0 = arith.constant 0 : i32
    %c0_i32_1 = arith.constant 0 : i32
    return %arg0, %c0_i32, %c0_i32_0 : i32, i32, i32
  }
  func.func @transform_14(%arg0: i32) -> (i32, i32, i32) {
    %c0_i32 = arith.constant 0 : i32
    %c0_i32_0 = arith.constant 0 : i32
    %c0_i32_1 = arith.constant 0 : i32
    return %arg0, %c0_i32, %c0_i32_0 : i32, i32, i32
  }
  func.func @transform_15(%arg0: i32) -> (i32, i32, i32) {
    %c0_i32 = arith.constant 0 : i32
    %c0_i32_0 = arith.constant 0 : i32
    %c0_i32_1 = arith.constant 0 : i32
    return %arg0, %c0_i32, %c0_i32_0 : i32, i32, i32
  }
  func.func @transform_16(%arg0: i32) -> (i32, i32, i32) {
    %c0_i32 = arith.constant 0 : i32
    %c0_i32_0 = arith.constant 0 : i32
    %c0_i32_1 = arith.constant 0 : i32
    return %arg0, %c0_i32, %c0_i32_0 : i32, i32, i32
  }
  func.func @transform_17(%arg0: i32) -> (i32, i32, i32) {
    %c0_i32 = arith.constant 0 : i32
    %c0_i32_0 = arith.constant 0 : i32
    %c0_i32_1 = arith.constant 0 : i32
    return %arg0, %c0_i32, %c0_i32_0 : i32, i32, i32
  }
  func.func @transform_18(%arg0: i32) -> (i32, i32, i32, i32) {
    %c0_i32 = arith.constant 0 : i32
    %c0_i32_0 = arith.constant 0 : i32
    %c0_i32_1 = arith.constant 0 : i32
    %c0_i32_2 = arith.constant 0 : i32
    return %arg0, %c0_i32, %c0_i32_0, %c0_i32_1 : i32, i32, i32, i32
  }
  func.func @transform_19(%arg0: i32) -> (i32, i32, i32, i32) {
    %c0_i32 = arith.constant 0 : i32
    %c0_i32_0 = arith.constant 0 : i32
    %c0_i32_1 = arith.constant 0 : i32
    %c0_i32_2 = arith.constant 0 : i32
    return %arg0, %c0_i32, %c0_i32_0, %c0_i32_1 : i32, i32, i32, i32
  }
  func.func @transform_20(%arg0: i32) -> (i32, i32, i32, i32) {
    %c0_i32 = arith.constant 0 : i32
    %c0_i32_0 = arith.constant 0 : i32
    %c0_i32_1 = arith.constant 0 : i32
    %c0_i32_2 = arith.constant 0 : i32
    return %arg0, %c0_i32, %c0_i32_0, %c0_i32_1 : i32, i32, i32, i32
  }
  func.func @transform_21(%arg0: i32) -> (i32, i32, i32) {
    %c0_i32 = arith.constant 0 : i32
    %c0_i32_0 = arith.constant 0 : i32
    %c0_i32_1 = arith.constant 0 : i32
    return %arg0, %c0_i32, %c0_i32_0 : i32, i32, i32
  }
  func.func @transform_22(%arg0: i32) -> (i32, i32) {
    %c0_i32 = arith.constant 0 : i32
    %c0_i32_0 = arith.constant 0 : i32
    %c0_i32_1 = arith.constant 0 : i32
    return %c0_i32, %c0_i32_0 : i32, i32
  }
  func.func @transform_23(%arg0: i32) -> (i32, i32) {
    %c0_i32 = arith.constant 0 : i32
    %c0_i32_0 = arith.constant 0 : i32
    %c0_i32_1 = arith.constant 0 : i32
    return %c0_i32, %c0_i32_0 : i32, i32
  }
  func.func @transform_24(%arg0: i32) -> (i32, i32) {
    %c0_i32 = arith.constant 0 : i32
    %c0_i32_0 = arith.constant 0 : i32
    %c0_i32_1 = arith.constant 0 : i32
    return %c0_i32, %c0_i32_0 : i32, i32
  }
  func.func @transform_25(%arg0: i32) -> (i32, i32) {
    %c0_i32 = arith.constant 0 : i32
    %c0_i32_0 = arith.constant 0 : i32
    %c0_i32_1 = arith.constant 0 : i32
    return %c0_i32, %c0_i32_0 : i32, i32
  }
  func.func @transform_26(%arg0: i32) -> (i32, i32) {
    %c0_i32 = arith.constant 0 : i32
    %c0_i32_0 = arith.constant 0 : i32
    %c0_i32_1 = arith.constant 0 : i32
    return %c0_i32, %c0_i32_0 : i32, i32
  }
}

</mosaic_0001>

<bundles_post_ra>
// kernel: _lambda_.1
= control target key start
LH: loop header
LB: loop body
LE: loop exit
PB: predicated region body
PF: predicated region fallthrough
CT: control target
= control target key end

     0   :  { %s4332_s27 = smov 0   ;;  %s5018_s0 = inlined_call_operand.vmem [shape: f32[8,192], index: 0, kind: input, shape index: {}]   ;;  %s5019_s1 = inlined_call_operand.vmem [shape: f32[16,32], index: 1, kind: input, shape index: {}]   ;;  %s5020_s2 = inlined_call_operand.vmem [shape: f32[8,32], index: 2, kind: input, shape index: {}]   ;;  %s5021_s3 = inlined_call_operand.vmem [shape: f32[24,24], index: 3, kind: input, shape index: {}]   ;;  %s5022_s4 = inlined_call_operand.vmem [shape: f32[1,192], index: 4, kind: input, shape index: {}]   ;;  %s5023_s5 = inlined_call_operand.vmem [shape: f32[1,192], index: 5, kind: input, shape index: {}]   ;;  %s5024_s6 = inlined_call_operand.vmem [shape: f32[192,32], index: 6, kind: input, shape index: {}]   ;;  %s5025_s7 = inlined_call_operand.vmem [shape: f32[1,32], index: 7, kind: input, shape index: {}]   ;;  %s5026_s8 = inlined_call_operand.vmem [shape: f32[1,32], index: 8, kind: input, shape index: {}]   ;;  %s5027_s9 = inlined_call_operand.vmem [shape: f32[1,32], index: 9, kind: input, shape index: {}]   ;;  %s5028_s10 = inlined_call_operand.vmem [shape: f32[2,1,32], index: 10, kind: input, shape index: {}]   ;;  %s5029_s11 = inlined_call_operand.vmem [shape: f32[2,1,32], index: 11, kind: input, shape index: {}]   ;;  %s5030_s12 = inlined_call_operand.vmem [shape: f32[2,32,96], index: 12, kind: input, shape index: {}]   ;;  %s5031_s13 = inlined_call_operand.vmem [shape: f32[2,1,96], index: 13, kind: input, shape index: {}]   ;;  %s5032_s14 = inlined_call_operand.vmem [shape: f32[2,32,32], index: 14, kind: input, shape index: {}]   ;;  %s5033_s15 = inlined_call_operand.vmem [shape: f32[2,1,32], index: 15, kind: input, shape index: {}]   ;;  %s5034_s16 = inlined_call_operand.vmem [shape: f32[2,1,32], index: 16, kind: input, shape index: {}]   ;;  %s5035_s17 = inlined_call_operand.vmem [shape: f32[2,1,32], index: 17, kind: input, shape index: {}]   ;;  %s5036_s18 = inlined_call_operand.vmem [shape: bf16[2,4,32,512], index: 18, kind: input, shape index: {}]   ;;  %s5037_s19 = inlined_call_operand.vmem [shape: f32[2,4,1,512], index: 19, kind: input, shape index: {}]   ;;  %s5038_s20 = inlined_call_operand.vmem [shape: bf16[2,4,512,32], index: 20, kind: input, shape index: {}]   ;;  %s5039_s21 = inlined_call_operand.vmem [shape: f32[2,1,32], index: 21, kind: input, shape index: {}]   ;;  %s5040_s22 = inlined_call_operand.vmem [shape: f32[1,32], index: 22, kind: input, shape index: {}]   ;;  %s5041_s23 = inlined_call_operand.vmem [shape: f32[1,32], index: 23, kind: input, shape index: {}]   ;;  %s5042_s24 = inlined_call_operand.vmem [shape: f32[32,128], index: 24, kind: input, shape index: {}]   ;;  %s5043_s25 = inlined_call_operand.vmem [shape: f32[1,128], index: 25, kind: input, shape index: {}]   ;;  %s5044_s26 = inlined_call_operand.vmem [shape: f32[24,128], index: 26, kind: output, shape index: {}]  }
   0x1   :  { %5051 = sst [smem:[#allocation4_spill]] %s5018_s0 }
   0x2   :  { %5052 = sst [smem:[#allocation5_spill]] %s5019_s1 }
   0x3   :  { %5053 = sst [smem:[#allocation6_spill]] %s5020_s2 }
   0x4   :  { %5054 = sst [smem:[#allocation7_spill]] %s5021_s3 }
   0x5   :  { %5055 = sst [smem:[#allocation8_spill]] %s5022_s4 }
   0x6   :  { %5056 = sst [smem:[#allocation9_spill]] %s5023_s5 }
   0x7   :  { %5057 = sst [smem:[#allocation10_spill]] %s5024_s6 }
   0x8   :  { %5058 = sst [smem:[#allocation11_spill]] %s5025_s7 }
   0x9   :  { %5059 = sst [smem:[#allocation12_spill]] %s5026_s8 }
   0xa   :  { %5060 = sst [smem:[#allocation13_spill]] %s5027_s9 }
   0xb   :  { %5061 = sst [smem:[#allocation14_spill]] %s5028_s10 }
   0xc   :  { %5062 = sst [smem:[#allocation15_spill]] %s5030_s12 }
   0xd   :  { %5063 = sst [smem:[#allocation16_spill]] %s5040_s22 }
   0xe   :  { %5064 = sst [smem:[#allocation17_spill]] %s5041_s23 }
   0xf   :  { %5065 = sst [smem:[#allocation18_spill]] %s5043_s25 }
  0x10   :  { %5066 = sst [smem:[#allocation19_spill]] %s5044_s26 }
  0x11 LB: > { %5067 = sst [smem:[#allocation3_spill]] %s4157_s27  ;;  %s4338_s3 = sadd.s32 4294967295, %s4157_s27   ;;  %s4157_s27 = sphi %s4332_s27, %s36_s27  }
  0x12   : > { %p3406_p0 = scmp.ge.s32.totalorder %s4157_s27, 1  ;;  %p802_p1 = scmp.lt.s32.totalorder %s4157_s27, 3 }
  0x14   : > { %p803_p2 = pnand %p3406_p0, %p802_p1 }
  0x15   : > { %p907_p3 = scmp.lt.s32.totalorder (!%p803_p2), %s4338_s3, 1  ;;  %s5069_s12 = sld [smem:[#allocation15_spill]] (!%p803_p2) }
  0x16   : > { %806 = sbr.rel (%p803_p2) target bundleno = 4035 (0xfc3), region = 124  ;;  %p3416_p4 = scmp.ne.s32.totalorder (!%p803_p2), %s4338_s3, 0 }
  0x1d   : > { %s4344_s7 = scalar_select %p907_p3, %s4338_s3, 1 }
  0x1e   : > { %956 = sbr.rel (%p3416_p4) target bundleno = 885 (0x375), region = 128  ;;  %s5070_s28 = sld [smem:[#allocation4_spill]] (!%p3416_p4)  ;;  %vm961_vm0 = vcmask (!%p3416_p4), 523264   ;;  %v4175_v7 = vmov (!%p3416_p4), 0.0|0.0   ;;  %v982_v51 = vlaneseq (!%p3416_p4)  ;;  %vm1113_vm1 = vcmask (!%p3416_p4), 261120  }
  0x1f   : > { %s3528_s2 = sshll.u32 %s4344_s7, 5  ;;  %s931_s23 = scalar_lea.vmem %s5034_s16, %s4344_s7  ;;  %3830 = vmatprep.subr.bf16.mxu0 (!%p3416_p4), %v4175_v7 }
  0x20   : > { %s4362_s8 = scalar_lea.vmem %s5069_s12, %s3528_s2  ;;  %s4367_s25 = scalar_lea.vmem %s5032_s14, %s3528_s2  ;;  %v983_v53 = vshrl.u32 (!%p3416_p4), %v982_v51, 7 }
  0x21   : > { %s3530_s1 = sshll.u32 %s4344_s7, 8  ;;  %s3413_s26 = sshll.u32 %s4344_s7, 4 }
  0x22   : > { %s4385_s22 = scalar_lea.vmem %s5036_s18, %s3530_s1  ;;  %s4391_s29 = scalar_lea.vmem %s5037_s19, %s3413_s26  ;;  %v984_v54 = vsub.s32 (!%p3416_p4), 0, %v983_v53  ;;  %v988_v55 = vsub.s32 (!%p3416_p4), 1, %v983_v53 }
  0x23   : > { %s3531_s4 = sshll.u32 %s4344_s7, 10  ;;  %s5072_s5 = sld [smem:[#allocation8_spill]] (!%p3416_p4) }
  0x24   : > { %s4397_s9 = scalar_lea.vmem %s5038_s20, %s3531_s4  ;;  %v957_v0 = vld [vmem:[%s5070_s28] sm:$0xff] (!%p3416_p4)  ;;  %v958_v1 = vld [vmem:[%s5070_s28 + $0x8] sm:$0xff] (!%p3416_p4)  ;;  %s5071_s4 = sld [smem:[#allocation10_spill]] (!%p3416_p4) }
  0x25   : > { %v962_v2 = vsel %vm961_vm0, %v958_v1, 0.0  ;;  %s5073_s1 = sld [smem:[#allocation9_spill]]  ;;  %s5074_s26 = sld [smem:[#allocation5_spill]] }
  0x26   : > { %v963_v3 = vadd.f32 %v962_v2, %v957_v0  ;;  %s5075_s10 = sld [smem:[#allocation11_spill]]  ;;  %s5076_s6 = sld [smem:[#allocation12_spill]] }
  0x27   : > { %s5077_s2 = sld [smem:[#allocation13_spill]] }
  0x28   : > { %964 = vadd.xlane.f32.xlu0 %v963_v3 }
  0x29   : > { %v959_v56 = vld [vmem:[%s5072_s5] sm:$0x3] }
  0x2a   : > { %v1007_v4 = vld [vmem:[%s5071_s4] sm:$0xff]  ;;  %v1008_v5 = vld [vmem:[%s5071_s4 + $0x8] sm:$0xff]  ;;  %v1009_v6 = vld [vmem:[%s5071_s4 + $0x10] sm:$0xff]  ;;  %v985_v58 = vrot.slane %v959_v56, %v984_v54  ;;  %v989_v59 = vrot.slane %v959_v56, %v988_v55 }
  0x2b   : > { %v3831_v8 = vpack.c.bf16 %v1008_v5, %v1007_v4  ;;  %v1010_v9 = vld [vmem:[%s5071_s4 + $0x18] sm:$0xff]  ;;  %v1011_v11 = vld [vmem:[%s5071_s4 + $0x20] sm:$0xff]  ;;  %v1012_v12 = vld [vmem:[%s5071_s4 + $0x28] sm:$0xff] }
  0x2c   : > { %v3834_v10 = vpack.c.bf16 %v1010_v9, %v1009_v6  ;;  %v3837_v13 = vpack.c.bf16 %v1012_v12, %v1011_v11  ;;  %v1013_v14 = vld [vmem:[%s5071_s4 + $0x30] sm:$0xff]  ;;  %v1014_v15 = vld [vmem:[%s5071_s4 + $0x38] sm:$0xff]  ;;  %v1015_v17 = vld [vmem:[%s5071_s4 + $0x40] sm:$0xff] }
  0x2d   : > { %3832 = vmatpush1.bf16.msra.mxu0 %v3831_v8  ;;  %v3840_v16 = vpack.c.bf16 %v1014_v15, %v1013_v14  ;;  %v1016_v18 = vld [vmem:[%s5071_s4 + $0x48] sm:$0xff]  ;;  %v1017_v20 = vld [vmem:[%s5071_s4 + $0x50] sm:$0xff]  ;;  %v1018_v21 = vld [vmem:[%s5071_s4 + $0x58] sm:$0xff] }
  0x2e   : > { %3833 = vmatprep.subr.bf16.mxu0 %v4175_v7  ;;  %v3843_v19 = vpack.c.bf16 %v1016_v18, %v1015_v17  ;;  %v3846_v22 = vpack.c.bf16 %v1018_v21, %v1017_v20  ;;  %v1019_v23 = vld [vmem:[%s5071_s4 + $0x60] sm:$0xff]  ;;  %v1020_v24 = vld [vmem:[%s5071_s4 + $0x68] sm:$0xff]  ;;  %v1021_v34 = vld [vmem:[%s5071_s4 + $0x70] sm:$0xff] }
  0x2f   : > { %v3849_v25 = vpack.c.bf16 %v1020_v24, %v1019_v23  ;;  %v1022_v35 = vld [vmem:[%s5071_s4 + $0x78] sm:$0xff]  ;;  %v1023_v37 = vld [vmem:[%s5071_s4 + $0x80] sm:$0xff]  ;;  %v1024_v38 = vld [vmem:[%s5071_s4 + $0x88] sm:$0xff] }
  0x30   : > { %v3852_v36 = vpack.c.bf16 %v1022_v35, %v1021_v34  ;;  %v1025_v39 = vld [vmem:[%s5071_s4 + $0x90] sm:$0xff]  ;;  %v3855_v40 = vpack.c.bf16 %v1024_v38, %v1023_v37  ;;  %v1026_v41 = vld [vmem:[%s5071_s4 + $0x98] sm:$0xff]  ;;  %v1027_v43 = vld [vmem:[%s5071_s4 + $0xa0] sm:$0xff] }
  0x31   : > { %3835 = vmatpush1.bf16.msra.mxu0 %v3834_v10  ;;  %v3858_v42 = vpack.c.bf16 %v1026_v41, %v1025_v39  ;;  %v1028_v44 = vld [vmem:[%s5071_s4 + $0xa8] sm:$0xff]  ;;  %v1029_v46 = vld [vmem:[%s5071_s4 + $0xb0] sm:$0xff]  ;;  %v1030_v47 = vld [vmem:[%s5071_s4 + $0xb8] sm:$0xff] }
  0x32   : > { %3836 = vmatprep.subr.bf16.mxu0 %v4175_v7  ;;  %v3861_v45 = vpack.c.bf16 %v1028_v44, %v1027_v43  ;;  %v3864_v48 = vpack.c.bf16 %v1030_v47, %v1029_v46  ;;  %v960_v57 = vld [vmem:[%s5073_s1] sm:$0x3]  ;;  %v1146_v6 = vld [vmem:[%s5074_s26 + $0x8] sm:$0xff] }
  0x33   : > { %v998_v62 = vrot.slane %v960_v57, %v984_v54  ;;  %v1002_v63 = vrot.slane %v960_v57, %v988_v55  ;;  %v1145_v5 = vld [vmem:[%s5074_s26] sm:$0xff]  ;;  %1148 = vst.msk [vmem:[#allocation2 + $0x10] sm:$0xff] %vm1113_vm1, %v1146_v6 }
  0x34   : > { %1147 = vst.msk [vmem:[#allocation2 + $0x8] sm:$0xff] %vm1113_vm1, %v1145_v5  ;;  %v3419_v21 = vld [vmem:[%s5076_s6] ss:$0 sm:$0xff] }
  0x35   : > { %3838 = vmatpush1.bf16.msra.mxu0 %v3837_v13  ;;  %v3420_v23 = vld [vmem:[%s5077_s2] ss:$0 sm:$0xff] }
  0x36   : > { %3839 = vmatprep.subr.bf16.mxu0 %v4175_v7 }
  0x39   : > { %3841 = vmatpush1.bf16.msra.mxu0 %v3840_v16 }
  0x3a   : > { %3842 = vmatprep.subr.bf16.mxu0 %v4175_v7 }
  0x3d   : > { %3844 = vmatpush1.bf16.msra.mxu0 %v3843_v19 }
  0x3e   : > { %3845 = vmatprep.subr.bf16.mxu0 %v4175_v7 }
  0x41   : > { %3847 = vmatpush1.bf16.msra.mxu0 %v3846_v22 }
  0x42   : > { %3848 = vmatprep.subr.bf16.mxu0 %v4175_v7 }
  0x45   : > { %3850 = vmatpush1.bf16.msra.mxu0 %v3849_v25 }
  0x46   : > { %3851 = vmatprep.subr.bf16.mxu0 %v4175_v7 }
  0x49   : > { %3853 = vmatpush1.bf16.msra.mxu0 %v3852_v36 }
  0x4a   : > { %3854 = vmatprep.subr.bf16.mxu0 %v4175_v7 }
  0x4d   : > { %3856 = vmatpush1.bf16.msra.mxu0 %v3855_v40 }
  0x4e   : > { %3857 = vmatprep.subr.bf16.mxu0 %v4175_v7 }
  0x51   : > { %3859 = vmatpush1.bf16.msra.mxu0 %v3858_v42 }
  0x52   : > { %3860 = vmatprep.subr.bf16.mxu0 %v4175_v7 }
  0x55   : > { %3862 = vmatpush1.bf16.msra.mxu0 %v3861_v45 }
  0x56   : > { %3863 = vmatprep.subr.bf16.mxu0 %v4175_v7  ;;  %v3417_v7 = vld [vmem:[%s5075_s10] ss:$0 sm:$0xff]  ;;  %s5078_s10 = sld [smem:[#allocation6_spill]] }
  0x59   : > { %3865 = vmatpush1.bf16.msra.mxu0 %v3864_v48 }
  0x5c   : > { %v1142_v25 = vld [vmem:[%s5078_s10] sm:$0xff] }
  0xb5   : > { %v965_v26 = vpop.xlane.xlu0 %964 }
  0xb6   : > { %v967_v27 = vmul.f32 0.0052083335, %v965_v26 }
  0xb8   : > { %v968_v28 = vsub.f32 %v957_v0, %v967_v27  ;;  %v969_v29 = vsub.f32 %v958_v1, %v967_v27 }
  0xba   : > { %v970_v30 = vmul.f32 %v968_v28, %v968_v28  ;;  %v971_v31 = vmul.f32 %v969_v29, %v969_v29 }
  0xbc   : > { %v972_v32 = vsel %vm961_vm0, %v971_v31, 0.0 }
  0xbd   : > { %v973_v33 = vadd.f32 %v972_v32, %v970_v30 }
  0xbf   : > { %974 = vadd.xlane.f32.xlu0 %v973_v33 }
 0x14c   : > { %v975_v49 = vpop.xlane.xlu0 %974 }
 0x14d   : > { %v976_v50 = vmul.f32 0.0052083335, %v975_v49 }
 0x14f   : > { %v977_v52 = vadd.f32 1e-05, %v976_v50 }
 0x151   : > { %3978 = vrsqrt.f32 %v977_v52 }
 0x15b   : > { %v3979_v60 = vpop.eup %3978 }
 0x15c   : > { %v980_v61 = vmul.f32 %v3979_v60, %v969_v29  ;;  %v979_v0 = vmul.f32 %v3979_v60, %v968_v28 }
 0x15e   : > { %v993_v1 = vmul.f32 %v989_v59, %v980_v61  ;;  %v992_v2 = vmul.f32 %v985_v58, %v979_v0 }
 0x160   : > { %v1006_v3 = vadd.f32 %v1002_v63, %v993_v1  ;;  %v1005_v4 = vadd.f32 %v998_v62, %v992_v2 }
 0x162   : > { %3418 = vmatprep.mubr.msk.f32.mxu0 %vm961_vm0, %v1006_v3 }
 0x163   : > { %1106 = vmatmul.mubr.f32.vlgmr.msra.gmra.mrb[0].mxu0 %v1005_v4 }
 0x236   : > { %v1107_v8 = vpop.f32.mrb[0].mxu0 }
 0x237   : > { %v1108_v9 = vadd.f32 %v3417_v7, %v1107_v8  ;;  %v1109_v10 = vpop.f32.mrb[1].mxu0 }
 0x239   : > { %v1114_v11 = vsel %vm1113_vm1, %v1108_v9, 0.0 }
 0x23a   : > { %1115 = vadd.xlane.f32.xlu1 %v1114_v11 }
 0x2c7   : > { %v1116_v12 = vpop.xlane.xlu1 %1115 }
 0x2c8   : > { %v1118_v13 = vmul.f32 0.03125, %v1116_v12 }
 0x2ca   : > { %v1119_v14 = vsub.f32 %v1108_v9, %v1118_v13 }
 0x2cc   : > { %v1120_v15 = vmul.f32 %v1119_v14, %v1119_v14 }
 0x2ce   : > { %v1121_v16 = vsel %vm1113_vm1, %v1120_v15, 0.0 }
 0x2cf   : > { %1122 = vadd.xlane.f32.xlu1 %v1121_v16 }
 0x35c   : > { %v1123_v17 = vpop.xlane.xlu1 %1122 }
 0x35d   : > { %v1124_v18 = vmul.f32 0.03125, %v1123_v17 }
 0x35f   : > { %v1125_v19 = vadd.f32 1e-05, %v1124_v18 }
 0x361   : > { %3980 = vrsqrt.f32 %v1125_v19 }
 0x36b   : > { %v3981_v20 = vpop.eup %3980 }
 0x36c   : > { %v1127_v22 = vmul.f32 %v3981_v20, %v1119_v14 }
 0x36e   : > { %v1134_v24 = vmul.f32 %v3419_v21, %v1127_v22 }
 0x370   : > { %v1141_v26 = vadd.f32 %v3420_v23, %v1134_v24 }
 0x372   : > { %v1143_v27 = vadd.f32 %v1142_v25, %v1141_v26 }
 0x374   : > { %1144 = vst.msk [vmem:[#allocation2] sm:$0xff] %vm1113_vm1, %v1143_v27 }
 0x375 PF: > { %vm1157_vm2 = vcmask 261120   ;;  %v1151_v29 = vld [vmem:[#allocation2 + $0x10] sm:$0xff]  ;;  %v1150_v30 = vld [vmem:[#allocation2 + $0x8] sm:$0xff]  ;;  %v1216_v49 = vld [vmem:[%s4362_s8] sm:$0xff]  ;;  %v4176_v52 = vmov 0.0|0.0   ;;  %vm4177_vm3 = vmmov 0   ;;  %s5081_s2 = scalar_lea.vmem %s5029_s11, %s4344_s7  ;;  %s5082_s10 = scalar_lea.vmem %s5031_s13, %s4344_s7 }
 0x376   : > { %v1164_v32 = vsel %vm1157_vm2, %v1151_v29, 0.0  ;;  %v1161_v33 = vsel %vm1157_vm2, %v1150_v30, 0.0  ;;  %v1217_v50 = vld [vmem:[%s4362_s8 + $0x8] sm:$0xff]  ;;  %v1218_v51 = vld [vmem:[%s4362_s8 + $0x10] sm:$0xff]  ;;  %3866 = vmatprep.subr.bf16.mxu0 %v4176_v52  ;;  %v1219_v54 = vld [vmem:[%s4362_s8 + $0x18] sm:$0xff]  ;;  %v4178_v55 = vmov 0.0   ;;  %3872 = vmatprep.subr.bf16.mxu1 %v4176_v52 }
 0x377   : > { %1165 = vadd.xlane.f32.xlu1 %v1164_v32  ;;  %v3867_v53 = vpack.c.bf16 %v1217_v50, %v1216_v49  ;;  %3667 = vmatprep.mubr.msk.f32.mxu0 %vm4177_vm3, %v4178_v55  ;;  %v3870_v56 = vpack.c.bf16 %v1219_v54, %v1218_v51  ;;  %s5079_s1 = sld [smem:[#allocation14_spill]]  ;;  %v3422_v5 = vld [vmem:[%s5081_s2] ss:$0 sm:$0xff]  ;;  %s4179_s8 = smov 96   ;;  %vm1325_vm4 = vcmask 64512   ;;  %vm1424_vm6 = vcmask 195584  }
 0x378   : > { %3682 = vmatprep.mubr.msk.f32.mxu1 %vm4177_vm3, %v4178_v55  ;;  %v3423_v18 = vld [vmem:[%s5082_s10] ss:$0 sm:$0xff]  ;;  %s4180_s12 = smov 80   ;;  %s4183_s27 = smov 112   ;;  %vm4585_vm5 = vmpackc.low %vm1325_vm4, %vm1325_vm4  ;;  %vm2318_vm7 = vcmask 130048  }
 0x379   : > { %3868 = vmatpush3.bf16.msra.mxu0 %v3867_v53  ;;  %s4184_s0 = smov 72   ;;  %s4185_s2 = smov 104  }
 0x37a   : > { %3869 = vmatprep.subr.bf16.mxu0 %v4176_v52  ;;  %s5085_s10 = sld [smem:[#allocation7_spill]]  ;;  %s4189_s30 = smov 40  }
 0x37b   : > { %v1149_v28 = vld [vmem:[#allocation2] sm:$0xff]  ;;  %s4190_s5 = smov 8  }
 0x37c   : > { %v1158_v31 = vsel %vm1157_vm2, %v1149_v28, 0.0 }
 0x37d   : > { %1159 = vadd.xlane.f32.xlu0 %v1158_v31  ;;  %3871 = vmatpush3.bf16.msra.mxu0 %v3870_v56  ;;  %s5080_s6 = scalar_lea.vmem %s5079_s1, %s4344_s7  ;;  %s4181_s1 = smov 88  }
 0x37e   : > { %3876 = vmatprep.subr.bf16.mxu0 %v4176_v52  ;;  %v3421_v3 = vld [vmem:[%s5080_s6] ss:$0 sm:$0xff]  ;;  %s4182_s6 = smov 120  }
 0x381   : > { %1162 = vadd.xlane.f32.xlu0 %v1161_v33 }
 0x404   : > { %v1166_v35 = vpop.xlane.xlu1 %1165 }
 0x405   : > { %v1170_v37 = vmul.f32 0.03125, %v1166_v35 }
 0x407   : > { %v1173_v39 = vsub.f32 %v1151_v29, %v1170_v37 }
 0x409   : > { %v1176_v43 = vmul.f32 %v1173_v39, %v1173_v39 }
 0x40a   : > { %v1160_v34 = vpop.xlane.xlu0 %1159 }
 0x40b   : > { %v1168_v36 = vmul.f32 0.03125, %v1160_v34  ;;  %v1183_v46 = vsel %vm1157_vm2, %v1176_v43, 0.0 }
 0x40d   : > { %v1171_v38 = vsub.f32 %v1149_v28, %v1168_v36 }
 0x40e   : > { %v1163_v40 = vpop.xlane.xlu0 %1162 }
 0x40f   : > { %v1169_v41 = vmul.f32 0.03125, %v1163_v40  ;;  %v1174_v42 = vmul.f32 %v1171_v38, %v1171_v38 }
 0x411   : > { %v1172_v44 = vsub.f32 %v1150_v30, %v1169_v41  ;;  %v1177_v45 = vsel %vm1157_vm2, %v1174_v42, 0.0 }
 0x412   : > { %1178 = vadd.xlane.f32.xlu1 %v1177_v45 }
 0x413   : > { %v1175_v47 = vmul.f32 %v1172_v44, %v1172_v44 }
 0x415   : > { %v1180_v48 = vsel %vm1157_vm2, %v1175_v47, 0.0 }
 0x416   : > { %1184 = vadd.xlane.f32.xlu1 %v1183_v46  ;;  %1181 = vadd.xlane.f32.xlu0 %v1180_v48 }
 0x49f   : > { %v1179_v57 = vpop.xlane.xlu1 %1178 }
 0x4a0   : > { %v1186_v58 = vmul.f32 0.03125, %v1179_v57 }
 0x4a2   : > { %v1189_v59 = vadd.f32 1e-05, %v1186_v58 }
 0x4a3   : > { %v1185_v60 = vpop.xlane.xlu1 %1184  ;;  %v1182_v61 = vpop.xlane.xlu0 %1181 }
 0x4a4   : > { %4022 = vrsqrt.f32 %v1189_v59  ;;  %v1188_v62 = vmul.f32 0.03125, %v1185_v60  ;;  %v1187_v63 = vmul.f32 0.03125, %v1182_v61  ;;  %v1152_v60 = vld [vmem:[%s5085_s10] sm:$0xff] }
 0x4a6   : > { %v1191_v0 = vadd.f32 1e-05, %v1188_v62  ;;  %v1190_v1 = vadd.f32 1e-05, %v1187_v63 }
 0x4a8   : > { %4024 = vrsqrt.f32 %v1191_v0 }
 0x4a9   : > { %4026 = vrsqrt.f32 %v1190_v1  ;;  %v1153_v1 = vld [vmem:[%s5085_s10 + $0x8] sm:$0xff] }
 0x4ae   : > { %v4023_v2 = vpop.eup %4022 }
 0x4af   : > { %v1195_v4 = vmul.f32 %v4023_v2, %v1171_v38 }
 0x4b1   : > { %v1204_v6 = vmul.f32 %v3421_v3, %v1195_v4 }
 0x4b2   : > { %v4025_v7 = vpop.eup %4024 }
 0x4b3   : > { %v4027_v8 = vpop.eup %4026  ;;  %v1213_v9 = vadd.f32 %v3422_v5, %v1204_v6  ;;  %v1197_v11 = vmul.f32 %v4025_v7, %v1173_v39  ;;  %v1154_v7 = vld [vmem:[%s5085_s10 + $0x10] sm:$0xff] }
 0x4b4   : > { %v1196_v10 = vmul.f32 %v4027_v8, %v1172_v44 }
 0x4b5   : > { %3668 = vmatmul.mubr.msk.f32.vlgmr.msra.gmra.mrb[0].mxu0 %vm1157_vm2, %v1213_v9  ;;  %v1206_v14 = vmul.f32 %v3421_v3, %v1197_v11 }
 0x4b6   : > { %3670 = vmatprep.mubr.msk.f32.mxu0 %vm4177_vm3, %v4178_v55  ;;  %v1205_v12 = vmul.f32 %v3421_v3, %v1196_v10 }
 0x4b7   : > { %v1215_v15 = vadd.f32 %v3422_v5, %v1206_v14 }
 0x4b8   : > { %v1214_v13 = vadd.f32 %v3422_v5, %v1205_v12 }
 0x4ba   : > { %3671 = vmatmul.mubr.msk.f32.gmra.mrb[2].mxu0 %vm1157_vm2, %v1214_v13 }
 0x4bb   : > { %3673 = vmatprep.mubr.msk.f32.mxu0 %vm4177_vm3, %v4178_v55 }
 0x4be   : > { %3674 = vmatmul.mubr.msk.f32.gmra.mrb[4].mxu0 %vm1157_vm2, %v1215_v15 }
 0x4bf   : > { %3697 = vmatprep.mubr.msk.f32.mxu0 %vm4177_vm3, %v4178_v55 }
 0x588   : > { %v1302_v16 = vpop.f32.mrb[0].mxu0 }
 0x589   : > { %v3669_v17 = vpop.f32.mrb[1].mxu0  ;;  %v1303_v20 = vadd.f32 %v3423_v18, %v1302_v16 }
 0x58d   : > { %v1307_v19 = vpop.f32.mrb[2].mxu0 }
 0x58e   : > { %v1308_v21 = vadd.f32 %v3423_v18, %v1307_v19  ;;  %v3672_v22 = vpop.f32.mrb[3].mxu0 }
 0x590   : > { %v4568_v23 = vpack.i.bf16 %v1308_v21, %v1303_v20 }
 0x591   : > { %v1312_v24 = vpop.f32.mrb[4].mxu0 }
 0x592   : > { %v4570_v25 = vadd.f32 %v3423_v18, %v1312_v24  ;;  %3983 = vrot.lane.b32.xlu0 %v4568_v23, %s4179_s8  ;;  %v3675_v26 = vpop.f32.mrb[5].mxu0 }
 0x594   : > { %1323 = vrot.lane.b32.xlu1 %v4570_v25, %s4179_s8  ;;  %s4191_s8 = smov 16  }
 0x596   : > { %3993 = vrot.lane.b32.xlu0 %v4568_v23, %s4180_s12 }
 0x598   : > { %3988 = vrot.lane.b32.xlu1 %v4568_v23, %s4181_s1 }
 0x59a   : > { %1558 = vrot.lane.b32.xlu0 %v1308_v21, %s4182_s6 }
 0x59c   : > { %1566 = vrot.lane.b32.xlu1 %v4570_v25, %s4181_s1 }
 0x59e   : > { %1807 = vrot.lane.b32.xlu0 %v4570_v25, %s4180_s12  ;;  %s4192_s12 = smov 24  }
 0x5a0   : > { %1556 = vrot.lane.b32.xlu1 %v1303_v20, %s4182_s6 }
 0x5a2   : > { %1797 = vrot.lane.b32.xlu0 %v1303_v20, %s4183_s27 }
 0x5a4   : > { %1560 = vrot.lane.b32.xlu1 %v4570_v25, %s4182_s6  ;;  %s5086_s6 = scalar_lea.vmem %s5033_s15, %s4344_s7 }
 0x5a6   : > { %1801 = vrot.lane.b32.xlu0 %v4570_v25, %s4183_s27 }
 0x5a8   : > { %3998 = vrot.lane.b32.xlu1 %v4568_v23, %s4184_s0 }
 0x5aa   : > { %2038 = vrot.lane.b32.xlu0 %v1303_v20, %s4185_s2 }
 0x5ac   : > { %1799 = vrot.lane.b32.xlu1 %v1308_v21, %s4183_s27  ;;  %s4186_s27 = smov 64  }
 0x5ae   : > { %2042 = vrot.lane.b32.xlu0 %v4570_v25, %s4185_s2 }
 0x5b0   : > { %2048 = vrot.lane.b32.xlu1 %v4570_v25, %s4184_s0  ;;  %s4187_s0 = smov 56  }
 0x5b4   : > { %2040 = vrot.lane.b32.xlu1 %v1308_v21, %s4185_s2  ;;  %s4188_s2 = smov 48  }
 0x604   : > { %v3984_v27 = vpop.permute.xlu0 %3983 }
 0x605   : > { %v3986_v28 = vunpack.i.h.bf16 %v3984_v27  ;;  %v3985_v29 = vunpack.i.l.bf16 %v3984_v27 }
 0x606   : > { %v1324_v30 = vpop.permute.xlu1 %1323 }
 0x607   : > { %v3873_v32 = vpack.c.bf16 %v3986_v28, %v3985_v29 }
 0x608   : > { %v3994_v38 = vpop.permute.xlu0 %3993 }
 0x609   : > { %3875 = vmatpush3.bf16.xpose.msk.msra.mxu1 %vm4585_vm5, %v3873_v32  ;;  %v3996_v40 = vunpack.i.h.bf16 %v3994_v38  ;;  %v3995_v41 = vunpack.i.l.bf16 %v3994_v38 }
 0x60a   : > { %3680 = vmatprep.subr.mxu1 %v4178_v55  ;;  %v3989_v33 = vpop.permute.xlu1 %3988 }
 0x60b   : > { %v3991_v34 = vunpack.i.h.bf16 %v3989_v33  ;;  %v3990_v35 = vunpack.i.l.bf16 %v3989_v33  ;;  %v3887_v43 = vpack.c.bf16 %v3996_v40, %v3995_v41 }
 0x60c   : > { %v1559_v44 = vpop.permute.xlu0 %1558 }
 0x60d   : > { %v3880_v37 = vpack.c.bf16 %v3991_v34, %v3990_v35 }
 0x60e   : > { %v1567_v36 = vpop.permute.xlu1 %1566 }
 0x610   : > { %v1808_v46 = vpop.permute.xlu0 %1807 }
 0x611   : > { %3681 = vmatpush3.xpose.msk.msra.mxu1 %vm1325_vm4, %v1324_v30 }
 0x612   : > { %3879 = vmatprep.subr.bf16.mxu1 %v4176_v52  ;;  %v1557_v39 = vpop.permute.xlu1 %1556 }
 0x614   : > { %3683 = vmatmul.mubr.msk.f32.vlgmr.msra.gmra.mrb[0].mxu1 %vm1325_vm4, %v1303_v20  ;;  %v1798_v49 = vpop.permute.xlu0 %1797 }
 0x615   : > { %3882 = vmatpush3.bf16.xpose.msk.msra.mxu1 %vm4585_vm5, %v3880_v37  ;;  %3685 = vmatprep.mubr.msk.f32.mxu1 %vm4177_vm3, %v4178_v55 }
 0x616   : > { %3710 = vmatprep.subr.mxu1 %v4178_v55  ;;  %v1561_v42 = vpop.permute.xlu1 %1560 }
 0x618   : > { %3686 = vmatmul.mubr.msk.f32.gmra.mrb[2].mxu1 %vm1325_vm4, %v1308_v21  ;;  %v1802_v53 = vpop.permute.xlu0 %1801 }
 0x619   : > { %3688 = vmatprep.mubr.msk.f32.mxu1 %vm4177_vm3, %v4178_v55 }
 0x61a   : > { %v3999_v45 = vpop.permute.xlu1 %3998 }
 0x61b   : > { %v4001_v47 = vunpack.i.h.bf16 %v3999_v45  ;;  %v4000_v48 = vunpack.i.l.bf16 %v3999_v45 }
 0x61c   : > { %3689 = vmatmul.mubr.msk.f32.gmra.mrb[4].mxu1 %vm1325_vm4, %v4570_v25  ;;  %v2039_v56 = vpop.permute.xlu0 %2038 }
 0x61d   : > { %3711 = vmatpush3.xpose.msk.msra.mxu1 %vm1325_vm4, %v1567_v36  ;;  %3712 = vmatprep.mubr.msk.f32.mxu1 %vm4177_vm3, %v4178_v55  ;;  %v3894_v50 = vpack.c.bf16 %v4001_v47, %v4000_v48 }
 0x61e   : > { %3886 = vmatprep.subr.bf16.mxu1 %v4176_v52  ;;  %v1800_v51 = vpop.permute.xlu1 %1799 }
 0x620   : > { %3713 = vmatmul.mubr.msk.f32.vlgmr.msra.gmra.mrb[6].mxu1 %vm1325_vm4, %v1557_v39  ;;  %v2043_v58 = vpop.permute.xlu0 %2042 }
 0x621   : > { %3889 = vmatpush3.bf16.xpose.msk.msra.mxu1 %vm4585_vm5, %v3887_v43  ;;  %3715 = vmatprep.mubr.msk.f32.mxu1 %vm4177_vm3, %v4178_v55 }
 0x622   : > { %3740 = vmatprep.subr.mxu1 %v4178_v55  ;;  %v2049_v54 = vpop.permute.xlu1 %2048 }
 0x624   : > { %3716 = vmatmul.mubr.msk.f32.gmra.mrb[8].mxu1 %vm1325_vm4, %v1559_v44 }
 0x625   : > { %3718 = vmatprep.mubr.msk.f32.mxu1 %vm4177_vm3, %v4178_v55 }
 0x626   : > { %v2041_v57 = vpop.permute.xlu1 %2040 }
 0x628   : > { %3719 = vmatmul.mubr.msk.f32.gmra.mrb[10].mxu1 %vm1325_vm4, %v1561_v42 }
 0x629   : > { %3741 = vmatpush3.xpose.msk.msra.mxu1 %vm1325_vm4, %v1808_v46  ;;  %3742 = vmatprep.mubr.msk.f32.mxu1 %vm4177_vm3, %v4178_v55 }
 0x62a   : > { %3893 = vmatprep.subr.bf16.mxu1 %v4176_v52 }
 0x62c   : > { %3743 = vmatmul.mubr.msk.f32.vlgmr.msra.gmra.mrb[12].mxu1 %vm1325_vm4, %v1798_v49 }
 0x62d   : > { %3896 = vmatpush3.bf16.xpose.msk.msra.mxu1 %vm4585_vm5, %v3894_v50  ;;  %3745 = vmatprep.mubr.msk.f32.mxu1 %vm4177_vm3, %v4178_v55 }
 0x62e   : > { %3770 = vmatprep.subr.mxu1 %v4178_v55 }
 0x630   : > { %3746 = vmatmul.mubr.msk.f32.gmra.mrb[14].mxu1 %vm1325_vm4, %v1800_v51 }
 0x631   : > { %3748 = vmatprep.mubr.msk.f32.mxu1 %vm4177_vm3, %v4178_v55 }
 0x634   : > { %3749 = vmatmul.mubr.msk.f32.gmra.mrb[16].mxu1 %vm1325_vm4, %v1802_v53 }
 0x635   : > { %3771 = vmatpush3.xpose.msk.msra.mxu1 %vm1325_vm4, %v2049_v54  ;;  %3772 = vmatprep.mubr.msk.f32.mxu1 %vm4177_vm3, %v4178_v55 }
 0x636   : > { %3900 = vmatprep.subr.bf16.mxu1 %v4176_v52 }
 0x638   : > { %3773 = vmatmul.mubr.msk.f32.vlgmr.msra.gmra.mrb[18].mxu1 %vm1325_vm4, %v2039_v56 }
 0x639   : > { %3775 = vmatprep.mubr.msk.f32.mxu1 %vm4177_vm3, %v4178_v55 }
 0x63c   : > { %3776 = vmatmul.mubr.msk.f32.gmra.mrb[20].mxu1 %vm1325_vm4, %v2041_v57 }
 0x63d   : > { %3778 = vmatprep.mubr.msk.f32.mxu1 %vm4177_vm3, %v4178_v55 }
 0x640   : > { %3779 = vmatmul.mubr.msk.f32.gmra.mrb[22].mxu1 %vm1325_vm4, %v2043_v58 }
 0x641   : > { %3804 = vmatprep.mubr.msk.f32.mxu1 %vm4177_vm3, %v4178_v55 }
 0x6e7   : > { %v1404_v59 = vpop.f32.mrb[0].mxu1 }
 0x6e8   : > { %v1418_v61 = vmul.f32 0.35355338, %v1404_v59  ;;  %v3684_v62 = vpop.f32.mrb[1].mxu1 }
 0x6ea   : > { %v4649_v63 = vadd.f32 %v1418_v61, %v1152_v60 }
 0x6eb   : > { %v1409_v0 = vpop.f32.mrb[2].mxu1 }
 0x6ec   : > { %v1419_v2 = vmul.f32 0.35355338, %v1409_v0  ;;  %v3687_v3 = vpop.f32.mrb[3].mxu1  ;;  %v1425_v4 = vsel %vm1424_vm6, %v4649_v63, -inf }
 0x6ed   : > { %1426 = vmax.xlane.f32.xlu1 %v1425_v4 }
 0x6ee   : > { %v4656_v5 = vadd.f32 %v1419_v2, %v1153_v1 }
 0x6ef   : > { %v1414_v6 = vpop.f32.mrb[4].mxu1 }
 0x6f0   : > { %v1420_v8 = vmul.f32 0.35355338, %v1414_v6  ;;  %v3690_v9 = vpop.f32.mrb[5].mxu1  ;;  %v1428_v10 = vsel %vm1424_vm6, %v4656_v5, -inf }
 0x6f1   : > { %1429 = vmax.xlane.f32.xlu0 %v1428_v10 }
 0x6f2   : > { %v4663_v11 = vadd.f32 %v1420_v8, %v1154_v7 }
 0x6f3   : > { %v1646_v12 = vpop.f32.mrb[6].mxu1 }
 0x6f4   : > { %v1660_v13 = vmul.f32 0.35355338, %v1646_v12  ;;  %v3714_v14 = vpop.f32.mrb[7].mxu1  ;;  %v1431_v15 = vsel %vm1424_vm6, %v4663_v11, -inf }
 0x6f5   : > { %1432 = vmax.xlane.f32.xlu0 %v1431_v15 }
 0x6f6   : > { %v4667_v16 = vadd.f32 %v1660_v13, %v1152_v60 }
 0x6f7   : > { %v1651_v17 = vpop.f32.mrb[8].mxu1 }
 0x6f8   : > { %v1661_v18 = vmul.f32 0.35355338, %v1651_v17  ;;  %v3717_v19 = vpop.f32.mrb[9].mxu1  ;;  %v1666_v20 = vsel %vm1424_vm6, %v4667_v16, -inf }
 0x6f9   : > { %1667 = vmax.xlane.f32.xlu0 %v1666_v20 }
 0x6fa   : > { %v4671_v21 = vadd.f32 %v1661_v18, %v1153_v1 }
 0x6fb   : > { %v1656_v22 = vpop.f32.mrb[10].mxu1 }
 0x6fc   : > { %v1662_v24 = vmul.f32 0.35355338, %v1656_v22  ;;  %v3720_v26 = vpop.f32.mrb[11].mxu1  ;;  %v1669_v27 = vsel %vm1424_vm6, %v4671_v21, -inf }
 0x6fd   : > { %1670 = vmax.xlane.f32.xlu1 %v1669_v27 }
 0x6fe   : > { %v4675_v28 = vadd.f32 %v1662_v24, %v1154_v7 }
 0x6ff   : > { %v1887_v29 = vpop.f32.mrb[12].mxu1 }
 0x700   : > { %v1901_v30 = vmul.f32 0.35355338, %v1887_v29  ;;  %v3744_v31 = vpop.f32.mrb[13].mxu1  ;;  %v1672_v32 = vsel %vm1424_vm6, %v4675_v28, -inf }
 0x701   : > { %1673 = vmax.xlane.f32.xlu0 %v1672_v32 }
 0x702   : > { %v4679_v33 = vadd.f32 %v1901_v30, %v1152_v60 }
 0x703   : > { %v1892_v34 = vpop.f32.mrb[14].mxu1 }
 0x704   : > { %v1902_v35 = vmul.f32 0.35355338, %v1892_v34  ;;  %v3747_v36 = vpop.f32.mrb[15].mxu1  ;;  %v1907_v37 = vsel %vm1424_vm6, %v4679_v33, -inf }
 0x705   : > { %1908 = vmax.xlane.f32.xlu1 %v1907_v37 }
 0x706   : > { %v4683_v38 = vadd.f32 %v1902_v35, %v1153_v1 }
 0x707   : > { %v1897_v39 = vpop.f32.mrb[16].mxu1 }
 0x708   : > { %v1903_v40 = vmul.f32 0.35355338, %v1897_v39  ;;  %v3750_v41 = vpop.f32.mrb[17].mxu1  ;;  %v1910_v42 = vsel %vm1424_vm6, %v4683_v38, -inf }
 0x709   : > { %1911 = vmax.xlane.f32.xlu0 %v1910_v42 }
 0x70a   : > { %v4687_v43 = vadd.f32 %v1903_v40, %v1154_v7 }
 0x70b   : > { %v2128_v44 = vpop.f32.mrb[18].mxu1 }
 0x70c   : > { %v2142_v45 = vmul.f32 0.35355338, %v2128_v44  ;;  %v3774_v46 = vpop.f32.mrb[19].mxu1  ;;  %v1913_v47 = vsel %vm1424_vm6, %v4687_v43, -inf }
 0x70d   : > { %1914 = vmax.xlane.f32.xlu1 %v1913_v47 }
 0x70e   : > { %v4691_v48 = vadd.f32 %v2142_v45, %v1152_v60 }
 0x70f   : > { %v2133_v49 = vpop.f32.mrb[20].mxu1 }
 0x710   : > { %v2143_v50 = vmul.f32 0.35355338, %v2133_v49  ;;  %v3777_v51 = vpop.f32.mrb[21].mxu1  ;;  %v2148_v53 = vsel %vm1424_vm6, %v4691_v48, -inf }
 0x711   : > { %2149 = vmax.xlane.f32.xlu0 %v2148_v53 }
 0x712   : > { %v4695_v54 = vadd.f32 %v2143_v50, %v1153_v1 }
 0x713   : > { %v2138_v56 = vpop.f32.mrb[22].mxu1 }
 0x714   : > { %v2144_v57 = vmul.f32 0.35355338, %v2138_v56  ;;  %v3780_v58 = vpop.f32.mrb[23].mxu1  ;;  %v2151_v59 = vsel %vm1424_vm6, %v4695_v54, -inf }
 0x715   : > { %2152 = vmax.xlane.f32.xlu1 %v2151_v59 }
 0x716   : > { %v4699_v61 = vadd.f32 %v2144_v57, %v1154_v7 }
 0x718   : > { %v2154_v60 = vsel %vm1424_vm6, %v4699_v61, -inf }
 0x719   : > { %2155 = vmax.xlane.f32.xlu0 %v2154_v60 }
 0x726   : > { %1462 = vrot.lane.b32.xlu1 %v4570_v25, %s4186_s27 }
 0x72a   : > { %4008 = vrot.lane.b32.xlu1 %v4568_v23, %s4187_s0 }
 0x72f   : > { %4003 = vrot.lane.b32.xlu0 %v4568_v23, %s4186_s27 }
 0x77a   : > { %v1427_v62 = vpop.xlane.xlu1 %1426 }
 0x77b   : > { %v1434_v0 = vsub.f32 %v4649_v63, %v1427_v62 }
 0x77d   : > { %v1437_v1 = vmul.f32 1.442695, %v1434_v0 }
 0x77e   : > { %v1430_v2 = vpop.xlane.xlu0 %1429 }
 0x77f   : > { %4028 = vpow2.f32 %v1437_v1  ;;  %v1435_v3 = vsub.f32 %v4656_v5, %v1430_v2 }
 0x781   : > { %v1439_v4 = vmul.f32 1.442695, %v1435_v3 }
 0x782   : > { %v1433_v6 = vpop.xlane.xlu0 %1432 }
 0x783   : > { %4030 = vpow2.f32 %v1439_v4  ;;  %v1436_v7 = vsub.f32 %v4663_v11, %v1433_v6 }
 0x785   : > { %v1441_v8 = vmul.f32 1.442695, %v1436_v7 }
 0x786   : > { %v1668_v9 = vpop.xlane.xlu0 %1667 }
 0x787   : > { %4032 = vpow2.f32 %v1441_v8  ;;  %v1675_v10 = vsub.f32 %v4667_v16, %v1668_v9 }
 0x789   : > { %v4711_v12 = vpop.eup %4028  ;;  %v1678_v13 = vmul.f32 1.442695, %v1675_v10 }
 0x78a   : > { %v1671_v14 = vpop.xlane.xlu1 %1670  ;;  %v1443_v63 = vsel %vm1424_vm6, %v4711_v12, 0.0 }
 0x78b   : > { %4034 = vpow2.f32 %v1678_v13  ;;  %v1676_v5 = vsub.f32 %v4671_v21, %v1671_v14  ;;  %1444 = vadd.xlane.f32.xlu1 %v1443_v63 }
 0x78d   : > { %v4716_v15 = vpop.eup %4030  ;;  %v1680_v17 = vmul.f32 1.442695, %v1676_v5 }
 0x78e   : > { %v1674_v11 = vpop.xlane.xlu0 %1673  ;;  %v1446_v18 = vsel %vm1424_vm6, %v4716_v15, 0.0 }
 0x78f   : > { %4036 = vpow2.f32 %v1680_v17  ;;  %v1677_v16 = vsub.f32 %v4675_v28, %v1674_v11  ;;  %1447 = vadd.xlane.f32.xlu0 %v1446_v18 }
 0x791   : > { %v4721_v19 = vpop.eup %4032  ;;  %v1682_v20 = vmul.f32 1.442695, %v1677_v16 }
 0x792   : > { %v1909_v22 = vpop.xlane.xlu1 %1908  ;;  %v1449_v24 = vsel %vm1424_vm6, %v4721_v19, 0.0 }
 0x793   : > { %4038 = vpow2.f32 %v1682_v20  ;;  %v1916_v21 = vsub.f32 %v4679_v33, %v1909_v22  ;;  %1450 = vadd.xlane.f32.xlu1 %v1449_v24 }
 0x795   : > { %v4726_v26 = vpop.eup %4034  ;;  %v1919_v27 = vmul.f32 1.442695, %v1916_v21 }
 0x796   : > { %v1912_v29 = vpop.xlane.xlu0 %1911  ;;  %v1684_v30 = vsel %vm1424_vm6, %v4726_v26, 0.0 }
 0x797   : > { %4040 = vpow2.f32 %v1919_v27  ;;  %v1917_v28 = vsub.f32 %v4683_v38, %v1912_v29  ;;  %1685 = vadd.xlane.f32.xlu0 %v1684_v30 }
 0x799   : > { %v4731_v31 = vpop.eup %4036  ;;  %v1921_v32 = vmul.f32 1.442695, %v1917_v28 }
 0x79a   : > { %v1915_v34 = vpop.xlane.xlu1 %1914  ;;  %v1687_v35 = vsel %vm1424_vm6, %v4731_v31, 0.0 }
 0x79b   : > { %4042 = vpow2.f32 %v1921_v32  ;;  %v1918_v33 = vsub.f32 %v4687_v43, %v1915_v34  ;;  %1688 = vadd.xlane.f32.xlu1 %v1687_v35 }
 0x79d   : > { %v4736_v36 = vpop.eup %4038  ;;  %v1923_v37 = vmul.f32 1.442695, %v1918_v33 }
 0x79e   : > { %v2150_v39 = vpop.xlane.xlu0 %2149  ;;  %v1690_v40 = vsel %vm1424_vm6, %v4736_v36, 0.0 }
 0x79f   : > { %4044 = vpow2.f32 %v1923_v37  ;;  %v2157_v38 = vsub.f32 %v4691_v48, %v2150_v39  ;;  %1691 = vadd.xlane.f32.xlu1 %v1690_v40 }
 0x7a1   : > { %v4741_v41 = vpop.eup %4040  ;;  %v2160_v42 = vmul.f32 1.442695, %v2157_v38 }
 0x7a2   : > { %v1925_v44 = vsel %vm1424_vm6, %v4741_v41, 0.0  ;;  %v2153_v56 = vpop.xlane.xlu1 %2152 }
 0x7a3   : > { %4046 = vpow2.f32 %v2160_v42  ;;  %1926 = vadd.xlane.f32.xlu1 %v1925_v44  ;;  %v2158_v60 = vsub.f32 %v4695_v54, %v2153_v56 }
 0x7a5   : > { %v4745_v43 = vpop.eup %4042  ;;  %v2162_v62 = vmul.f32 1.442695, %v2158_v60 }
 0x7a6   : > { %v2156_v45 = vpop.xlane.xlu0 %2155  ;;  %v1928_v46 = vsel %vm1424_vm6, %v4745_v43, 0.0  ;;  %v1463_v59 = vpop.permute.xlu1 %1462 }
 0x7a7   : > { %1929 = vadd.xlane.f32.xlu0 %v1928_v46  ;;  %v2159_v0 = vsub.f32 %v4699_v61, %v2156_v45  ;;  %4048 = vpow2.f32 %v2162_v62 }
 0x7a9   : > { %v4749_v47 = vpop.eup %4044  ;;  %v2164_v1 = vmul.f32 1.442695, %v2159_v0 }
 0x7aa   : > { %v4004_v49 = vpop.permute.xlu0 %4003  ;;  %v1931_v48 = vsel %vm1424_vm6, %v4749_v47, 0.0  ;;  %v4009_v54 = vpop.permute.xlu1 %4008 }
 0x7ab   : > { %v4006_v50 = vunpack.i.h.bf16 %v4004_v49  ;;  %1932 = vadd.xlane.f32.xlu1 %v1931_v48  ;;  %v4005_v51 = vunpack.i.l.bf16 %v4004_v49  ;;  %4050 = vpow2.f32 %v2164_v1  ;;  %v4011_v9 = vunpack.i.h.bf16 %v4009_v54 }
 0x7ac   : > { %v4010_v10 = vunpack.i.l.bf16 %v4009_v54 }
 0x7ad   : > { %v4753_v53 = vpop.eup %4046  ;;  %v3877_v57 = vpack.c.bf16 %v4006_v50, %v4005_v51 }
 0x7ae   : > { %v2166_v58 = vsel %vm1424_vm6, %v4753_v53, 0.0  ;;  %v3884_v63 = vpack.c.bf16 %v4011_v9, %v4010_v10  ;;  %v2327_v9 = vld [vmem:[%s4367_s25 + $0x10] sm:$0xff]  ;;  %v2328_v10 = vld [vmem:[%s4367_s25 + $0x18] sm:$0xff] }
 0x7af   : > { %2167 = vadd.xlane.f32.xlu0 %v2166_v58  ;;  %3878 = vmatpush3.bf16.msra.mxu0 %v3877_v57 }
 0x7b0   : > { %3695 = vmatprep.subr.mxu0 %v4178_v55 }
 0x7b1   : > { %v4764_v2 = vpop.eup %4048 }
 0x7b2   : > { %v2169_v3 = vsel %vm1424_vm6, %v4764_v2, 0.0 }
 0x7b3   : > { %3696 = vmatpush3.msra.mxu0 %v1463_v59 }
 0x7b4   : > { %3883 = vmatprep.subr.bf16.mxu0 %v4176_v52 }
 0x7b5   : > { %v4768_v4 = vpop.eup %4050 }
 0x7b6   : > { %v2172_v6 = vsel %vm1424_vm6, %v4768_v4, 0.0 }
 0x7bc   : > { %4013 = vrot.lane.b32.xlu1 %v4568_v23, %s4188_s2 }
 0x7c5   : > { %1703 = vrot.lane.b32.xlu0 %v4570_v25, %s4187_s0 }
 0x7e0   : > { %2170 = vadd.xlane.f32.xlu1 %v2169_v3 }
 0x7e4   : > { %2173 = vadd.xlane.f32.xlu0 %v2172_v6 }
 0x7f1   : > { %1944 = vrot.lane.b32.xlu1 %v4570_v25, %s4188_s2 }
 0x7f5   : > { %4018 = vrot.lane.b32.xlu1 %v4568_v23, %s4189_s30 }
 0x7f9   : > { %2185 = vrot.lane.b32.xlu1 %v4570_v25, %s4189_s30 }
 0x818   : > { %v1445_v61 = vpop.xlane.xlu1 %1444 }
 0x819   : > { %4052 = vrcp.f32 %v1445_v61  ;;  %v2325_v61 = vld [vmem:[%s4367_s25] sm:$0xff] }
 0x81c   : > { %v1448_v7 = vpop.xlane.xlu0 %1447 }
 0x81d   : > { %4054 = vrcp.f32 %v1448_v7  ;;  %v2326_v7 = vld [vmem:[%s4367_s25 + $0x8] sm:$0xff] }
 0x820   : > { %v1451_v8 = vpop.xlane.xlu1 %1450 }
 0x821   : > { %4056 = vrcp.f32 %v1451_v8  ;;  %v3901_v8 = vpack.c.bf16 %v2326_v7, %v2325_v61 }
 0x823   : > { %v4053_v13 = vpop.eup %4052  ;;  %3902 = vmatpush3.bf16.msra.mxu1 %v3901_v8 }
 0x824   : > { %v1455_v14 = vmul.f32 %v4053_v13, %v4711_v12  ;;  %v1686_v18 = vpop.xlane.xlu0 %1685  ;;  %3903 = vmatprep.subr.bf16.mxu1 %v4176_v52  ;;  %v3904_v13 = vpack.c.bf16 %v2328_v10, %v2327_v9 }
 0x825   : > { %4058 = vrcp.f32 %v1686_v18 }
 0x826   : > { %3698 = vmatmul.mubr.msk.f32.vlgmr.msra.gmra.mrb[6].mxu0 %vm1424_vm6, %v1455_v14 }
 0x827   : > { %v4055_v5 = vpop.eup %4054  ;;  %3885 = vmatpush3.bf16.msra.mxu0 %v3884_v63  ;;  %3700 = vmatprep.mubr.msk.f32.mxu0 %vm4177_vm3, %v4178_v55 }
 0x828   : > { %v1689_v23 = vpop.xlane.xlu1 %1688  ;;  %v1456_v25 = vmul.f32 %v4055_v5, %v4716_v15  ;;  %3725 = vmatprep.subr.mxu0 %v4178_v55  ;;  %3905 = vmatpush3.bf16.msra.mxu1 %v3904_v13 }
 0x829   : > { %4060 = vrcp.f32 %v1689_v23 }
 0x82a   : > { %3701 = vmatmul.mubr.msk.f32.gmra.mrb[8].mxu0 %vm1424_vm6, %v1456_v25 }
 0x82b   : > { %v4057_v17 = vpop.eup %4056  ;;  %3703 = vmatprep.mubr.msk.f32.mxu0 %vm4177_vm3, %v4178_v55 }
 0x82c   : > { %v1457_v12 = vmul.f32 %v4057_v17, %v4721_v19  ;;  %v1692_v11 = vpop.xlane.xlu1 %1691 }
 0x82d   : > { %4062 = vrcp.f32 %v1692_v11 }
 0x82e   : > { %3704 = vmatmul.mubr.msk.f32.gmra.mrb[10].mxu0 %vm1424_vm6, %v1457_v12 }
 0x82f   : > { %3727 = vmatprep.mubr.msk.f32.mxu0 %vm4177_vm3, %v4178_v55  ;;  %v4059_v21 = vpop.eup %4058 }
 0x830   : > { %v1927_v16 = vpop.xlane.xlu1 %1926  ;;  %v1696_v19 = vmul.f32 %v4059_v21, %v4726_v26 }
 0x831   : > { %4064 = vrcp.f32 %v1927_v16 }
 0x833   : > { %v4061_v28 = vpop.eup %4060 }
 0x834   : > { %v1930_v15 = vpop.xlane.xlu0 %1929  ;;  %v1697_v34 = vmul.f32 %v4061_v28, %v4731_v31 }
 0x835   : > { %4066 = vrcp.f32 %v1930_v15 }
 0x837   : > { %v4063_v35 = vpop.eup %4062 }
 0x838   : > { %v1933_v20 = vpop.xlane.xlu1 %1932  ;;  %v1698_v26 = vmul.f32 %v4063_v35, %v4736_v36 }
 0x839   : > { %4068 = vrcp.f32 %v1933_v20 }
 0x83b   : > { %v4065_v31 = vpop.eup %4064 }
 0x83c   : > { %v4014_v22 = vpop.permute.xlu1 %4013  ;;  %v2168_v24 = vpop.xlane.xlu0 %2167  ;;  %v1937_v37 = vmul.f32 %v4065_v31, %v4741_v41 }
 0x83d   : > { %v4016_v27 = vunpack.i.h.bf16 %v4014_v22  ;;  %v4015_v29 = vunpack.i.l.bf16 %v4014_v22  ;;  %4070 = vrcp.f32 %v2168_v24 }
 0x83f   : > { %v3891_v32 = vpack.c.bf16 %v4016_v27, %v4015_v29  ;;  %v4067_v40 = vpop.eup %4066 }
 0x840   : > { %v1704_v30 = vpop.permute.xlu0 %1703  ;;  %v1938_v42 = vmul.f32 %v4067_v40, %v4745_v43 }
 0x841   : > { %3726 = vmatpush3.msra.mxu0 %v1704_v30 }
 0x842   : > { %3728 = vmatmul.mubr.msk.f32.vlgmr.msra.gmra.mrb[12].mxu0 %vm1424_vm6, %v1696_v19  ;;  %3890 = vmatprep.subr.bf16.mxu0 %v4176_v52 }
 0x843   : > { %3892 = vmatpush3.bf16.msra.mxu0 %v3891_v32  ;;  %3730 = vmatprep.mubr.msk.f32.mxu0 %vm4177_vm3, %v4178_v55  ;;  %v4069_v44 = vpop.eup %4068 }
 0x844   : > { %3755 = vmatprep.subr.mxu0 %v4178_v55  ;;  %v1939_v49 = vmul.f32 %v4069_v44, %v4749_v47 }
 0x846   : > { %3731 = vmatmul.mubr.msk.f32.gmra.mrb[14].mxu0 %vm1424_vm6, %v1697_v34 }
 0x847   : > { %3733 = vmatprep.mubr.msk.f32.mxu0 %vm4177_vm3, %v4178_v55  ;;  %v4071_v48 = vpop.eup %4070 }
 0x848   : > { %v2178_v43 = vmul.f32 %v4071_v48, %v4753_v53 }
 0x84a   : > { %3734 = vmatmul.mubr.msk.f32.gmra.mrb[16].mxu0 %vm1424_vm6, %v1698_v26 }
 0x84b   : > { %3757 = vmatprep.mubr.msk.f32.mxu0 %vm4177_vm3, %v4178_v55 }
 0x86d   : > { %v2171_v33 = vpop.xlane.xlu1 %2170 }
 0x86e   : > { %4072 = vrcp.f32 %v2171_v33 }
 0x871   : > { %v1945_v39 = vpop.permute.xlu1 %1944  ;;  %v2174_v36 = vpop.xlane.xlu0 %2173 }
 0x872   : > { %3756 = vmatpush3.msra.mxu0 %v1945_v39  ;;  %4074 = vrcp.f32 %v2174_v36 }
 0x873   : > { %3758 = vmatmul.mubr.msk.f32.vlgmr.msra.gmra.mrb[18].mxu0 %vm1424_vm6, %v1937_v37  ;;  %3897 = vmatprep.subr.bf16.mxu0 %v4176_v52 }
 0x874   : > { %3760 = vmatprep.mubr.msk.f32.mxu0 %vm4177_vm3, %v4178_v55 }
 0x875   : > { %v4019_v38 = vpop.permute.xlu1 %4018 }
 0x876   : > { %v4021_v45 = vunpack.i.h.bf16 %v4019_v38  ;;  %v4020_v46 = vunpack.i.l.bf16 %v4019_v38  ;;  %v3466_v38 = vld [vmem:[%s5086_s6] ss:$0 sm:$0xff] }
 0x877   : > { %3761 = vmatmul.mubr.msk.f32.gmra.mrb[20].mxu0 %vm1424_vm6, %v1938_v42  ;;  %v4082_v42 = vld [vmem:[#allocation2] sm:$0xff] }
 0x878   : > { %v3898_v41 = vpack.c.bf16 %v4021_v45, %v4020_v46  ;;  %3763 = vmatprep.mubr.msk.f32.mxu0 %vm4177_vm3, %v4178_v55  ;;  %v4073_v51 = vpop.eup %4072 }
 0x879   : > { %v2186_v50 = vpop.permute.xlu1 %2185  ;;  %v2179_v47 = vmul.f32 %v4073_v51, %v4764_v2 }
 0x87a   : > { %3899 = vmatpush3.bf16.msra.mxu0 %v3898_v41 }
 0x87b   : > { %3764 = vmatmul.mubr.msk.f32.gmra.mrb[22].mxu0 %vm1424_vm6, %v1939_v49  ;;  %3785 = vmatprep.subr.mxu0 %v4178_v55  ;;  %v4083_v49 = vld [vmem:[#allocation2 + $0x8] sm:$0xff] }
 0x87c   : > { %3787 = vmatprep.mubr.msk.f32.mxu0 %vm4177_vm3, %v4178_v55  ;;  %v4075_v56 = vpop.eup %4074 }
 0x87d   : > { %v2180_v57 = vmul.f32 %v4075_v56, %v4768_v4 }
 0x87e   : > { %3786 = vmatpush3.msra.mxu0 %v2186_v50 }
 0x87f   : > { %3788 = vmatmul.mubr.msk.f32.vlgmr.msra.gmra.mrb[24].mxu0 %vm1424_vm6, %v2178_v43 }
 0x880   : > { %3790 = vmatprep.mubr.msk.f32.mxu0 %vm4177_vm3, %v4178_v55 }
 0x883   : > { %3791 = vmatmul.mubr.msk.f32.gmra.mrb[26].mxu0 %vm1424_vm6, %v2179_v47  ;;  %v4084_v47 = vld [vmem:[#allocation2 + $0x10] sm:$0xff] }
 0x884   : > { %3793 = vmatprep.mubr.msk.f32.mxu0 %vm4177_vm3, %v4178_v55 }
 0x887   : > { %3794 = vmatmul.mubr.msk.f32.gmra.mrb[28].mxu0 %vm1424_vm6, %v2180_v57 }
 0x8f9   : > { %v1542_v53 = vpop.f32.mrb[6].mxu0 }
 0x8fa   : > { %v3699_v58 = vpop.f32.mrb[7].mxu0 }
 0x8fd   : > { %v1547_v59 = vpop.f32.mrb[8].mxu0 }
 0x8fe   : > { %v3702_v60 = vpop.f32.mrb[9].mxu0 }
 0x901   : > { %v1552_v62 = vpop.f32.mrb[10].mxu0 }
 0x902   : > { %v3705_v0 = vpop.f32.mrb[11].mxu0 }
 0x915   : > { %v1783_v1 = vpop.f32.mrb[12].mxu0 }
 0x916   : > { %2282 = vrot.lane.b32.xlu1 %v1783_v1, %s4190_s5  ;;  %v3729_v2 = vpop.f32.mrb[13].mxu0 }
 0x919   : > { %v1788_v3 = vpop.f32.mrb[14].mxu0 }
 0x91a   : > { %2284 = vrot.lane.b32.xlu0 %v1788_v3, %s4190_s5  ;;  %v3732_v6 = vpop.f32.mrb[15].mxu0 }
 0x91d   : > { %v1793_v4 = vpop.f32.mrb[16].mxu0 }
 0x91e   : > { %2286 = vrot.lane.b32.xlu1 %v1793_v4, %s4190_s5  ;;  %v3735_v54 = vpop.f32.mrb[17].mxu0  ;;  %s5087_s5 = scalar_lea.vmem %s5035_s17, %s4344_s7 }
 0x946   : > { %v2024_v14 = vpop.f32.mrb[18].mxu0 }
 0x947   : > { %2294 = vrot.lane.b32.xlu1 %v2024_v14, %s4191_s8  ;;  %v3759_v63 = vpop.f32.mrb[19].mxu0 }
 0x94a   : > { %v2029_v5 = vpop.f32.mrb[20].mxu0 }
 0x94b   : > { %2296 = vrot.lane.b32.xlu1 %v2029_v5, %s4191_s8  ;;  %v3762_v23 = vpop.f32.mrb[21].mxu0 }
 0x94e   : > { %v2034_v25 = vpop.f32.mrb[22].mxu0 }
 0x94f   : > { %2298 = vrot.lane.b32.xlu1 %v2034_v25, %s4191_s8  ;;  %v3765_v17 = vpop.f32.mrb[23].mxu0 }
 0x952   : > { %v2265_v12 = vpop.f32.mrb[24].mxu0 }
 0x953   : > { %2306 = vrot.lane.b32.xlu1 %v2265_v12, %s4192_s12  ;;  %v3789_v11 = vpop.f32.mrb[25].mxu0 }
 0x956   : > { %v2270_v18 = vpop.f32.mrb[26].mxu0 }
 0x957   : > { %2308 = vrot.lane.b32.xlu1 %v2270_v18, %s4192_s12  ;;  %v3792_v52 = vpop.f32.mrb[27].mxu0 }
 0x95a   : > { %v2275_v16 = vpop.f32.mrb[28].mxu0 }
 0x95b   : > { %2310 = vrot.lane.b32.xlu1 %v2275_v16, %s4192_s12  ;;  %v3795_v15 = vpop.f32.mrb[29].mxu0 }
 0x95c   : > { %v3467_v15 = vld [vmem:[%s931_s23] ss:$0 sm:$0xff]  ;;  %s4887_s23 = smov 0  }
 0x988   : > { %v2283_v20 = vpop.permute.xlu1 %2282 }
 0x989   : > { %v2315_v29 = vsel %vm1325_vm4, %v1542_v53, %v2283_v20 }
 0x98c   : > { %v2285_v19 = vpop.permute.xlu0 %2284 }
 0x98d   : > { %v2316_v34 = vsel %vm1325_vm4, %v1547_v59, %v2285_v19 }
 0x990   : > { %v2287_v22 = vpop.permute.xlu1 %2286 }
 0x991   : > { %v2317_v31 = vsel %vm1325_vm4, %v1552_v62, %v2287_v22 }
 0x9b9   : > { %v2295_v24 = vpop.permute.xlu1 %2294 }
 0x9ba   : > { %v2319_v30 = vsel %vm2318_vm7, %v2315_v29, %v2295_v24 }
 0x9bd   : > { %v2297_v21 = vpop.permute.xlu1 %2296 }
 0x9be   : > { %v2320_v35 = vsel %vm2318_vm7, %v2316_v34, %v2297_v21  ;;  %v3468_v21 = vld [vmem:[%s5087_s5] ss:$0 sm:$0xff] }
 0x9c1   : > { %v2299_v27 = vpop.permute.xlu1 %2298 }
 0x9c2   : > { %v2321_v37 = vsel %vm2318_vm7, %v2317_v31, %v2299_v27  ;;  %v4883_v31 = vmov 0.0  }
 0x9c5   : > { %v2307_v28 = vpop.permute.xlu1 %2306 }
 0x9c6   : > { %v2322_v32 = vsel %vm1424_vm6, %v2319_v30, %v2307_v28 }
 0x9c7   : > { %3805 = vmatmul.mubr.msk.f32.vlgmr.msra.gmra.mrb[24].mxu1 %vm1157_vm2, %v2322_v32 }
 0x9c8   : > { %3807 = vmatprep.mubr.msk.f32.mxu1 %vm4177_vm3, %v4178_v55 }
 0x9c9   : > { %v2309_v26 = vpop.permute.xlu1 %2308 }
 0x9ca   : > { %v2323_v33 = vsel %vm1424_vm6, %v2320_v35, %v2309_v26 }
 0x9cb   : > { %3808 = vmatmul.mubr.msk.f32.gmra.mrb[26].mxu1 %vm1157_vm2, %v2323_v33  ;;  %v4881_v33 = vmov 0.0  }
 0x9cc   : > { %3810 = vmatprep.mubr.msk.f32.mxu1 %vm4177_vm3, %v4178_v55 }
 0x9cd   : > { %v2311_v39 = vpop.permute.xlu1 %2310 }
 0x9ce   : > { %v2324_v40 = vsel %vm1424_vm6, %v2321_v37, %v2311_v39  ;;  %v4885_v37 = vmov 0.0  }
 0x9cf   : > { %3811 = vmatmul.mubr.msk.f32.gmra.mrb[28].mxu1 %vm1157_vm2, %v2324_v40 }
 0xa9a   : > { %v2404_v36 = vpop.f32.mrb[24].mxu1 }
 0xa9b   : > { %v2418_v44 = vadd.f32 %v4082_v42, %v2404_v36  ;;  %v3806_v45 = vpop.f32.mrb[25].mxu1 }
 0xa9d   : > { %v4849_v46 = vadd.f32 %v3466_v38, %v2418_v44 }
 0xa9e   : > { %v2409_v41 = vpop.f32.mrb[26].mxu1 }
 0xa9f   : > { %v2419_v55 = vadd.f32 %v4083_v49, %v2409_v41  ;;  %v3809_v48 = vpop.f32.mrb[27].mxu1  ;;  %v2433_v43 = vsel %vm1157_vm2, %v4849_v46, 0.0 }
 0xaa0   : > { %2434 = vadd.xlane.f32.xlu1 %v2433_v43 }
 0xaa1   : > { %v4853_v50 = vadd.f32 %v3466_v38, %v2419_v55 }
 0xaa2   : > { %v2414_v51 = vpop.f32.mrb[28].mxu1 }
 0xaa3   : > { %v2420_v56 = vadd.f32 %v4084_v47, %v2414_v51  ;;  %v3812_v57 = vpop.f32.mrb[29].mxu1  ;;  %v2436_v53 = vsel %vm1157_vm2, %v4853_v50, 0.0 }
 0xaa4   : > { %2437 = vadd.xlane.f32.xlu0 %v2436_v53 }
 0xaa5   : > { %v4857_v58 = vadd.f32 %v3466_v38, %v2420_v56 }
 0xaa7   : > { %v2439_v59 = vsel %vm1157_vm2, %v4857_v58, 0.0 }
 0xaa8   : > { %2440 = vadd.xlane.f32.xlu0 %v2439_v59 }
 0xb2d   : > { %v2435_v60 = vpop.xlane.xlu1 %2434 }
 0xb2e   : > { %v2442_v62 = vmul.f32 0.03125, %v2435_v60 }
 0xb30   : > { %v2445_v0 = vsub.f32 %v4849_v46, %v2442_v62 }
 0xb31   : > { %v2438_v1 = vpop.xlane.xlu0 %2437 }
 0xb32   : > { %v2443_v2 = vmul.f32 0.03125, %v2438_v1  ;;  %v2448_v3 = vmul.f32 %v2445_v0, %v2445_v0 }
 0xb34   : > { %v2446_v6 = vsub.f32 %v4853_v50, %v2443_v2  ;;  %v2451_v4 = vsel %vm1157_vm2, %v2448_v3, 0.0 }
 0xb35   : > { %v2441_v54 = vpop.xlane.xlu0 %2440  ;;  %2452 = vadd.xlane.f32.xlu1 %v2451_v4 }
 0xb36   : > { %v2444_v61 = vmul.f32 0.03125, %v2441_v54  ;;  %v2449_v7 = vmul.f32 %v2446_v6, %v2446_v6 }
 0xb38   : > { %v2447_v8 = vsub.f32 %v4857_v58, %v2444_v61  ;;  %v2454_v9 = vsel %vm1157_vm2, %v2449_v7, 0.0 }
 0xb39   : > { %2455 = vadd.xlane.f32.xlu0 %v2454_v9 }
 0xb3a   : > { %v2450_v10 = vmul.f32 %v2447_v8, %v2447_v8 }
 0xb3c   : > { %v2457_v13 = vsel %vm1157_vm2, %v2450_v10, 0.0 }
 0xb3d   : > { %2458 = vadd.xlane.f32.xlu1 %v2457_v13 }
 0xbc2   : > { %v2453_v14 = vpop.xlane.xlu1 %2452 }
 0xbc3   : > { %v2460_v63 = vmul.f32 0.03125, %v2453_v14 }
 0xbc5   : > { %v2463_v5 = vadd.f32 1e-05, %v2460_v63 }
 0xbc6   : > { %v2456_v23 = vpop.xlane.xlu0 %2455 }
 0xbc7   : > { %4076 = vrsqrt.f32 %v2463_v5  ;;  %v2461_v25 = vmul.f32 0.03125, %v2456_v23 }
 0xbc9   : > { %v2464_v17 = vadd.f32 1e-05, %v2461_v25 }
 0xbca   : > { %v2459_v12 = vpop.xlane.xlu1 %2458 }
 0xbcb   : > { %4078 = vrsqrt.f32 %v2464_v17  ;;  %v2462_v11 = vmul.f32 0.03125, %v2459_v12 }
 0xbcd   : > { %v2465_v18 = vadd.f32 1e-05, %v2462_v11 }
 0xbcf   : > { %4080 = vrsqrt.f32 %v2465_v18 }
 0xbd1   : > { %v4077_v52 = vpop.eup %4076 }
 0xbd2   : > { %v2469_v16 = vmul.f32 %v4077_v52, %v2445_v0 }
 0xbd4   : > { %v2478_v22 = vmul.f32 %v3467_v15, %v2469_v16 }
 0xbd5   : > { %v4079_v20 = vpop.eup %4078 }
 0xbd6   : > { %v2470_v24 = vmul.f32 %v4079_v20, %v2446_v6  ;;  %v2487_v19 = vadd.f32 %v3468_v21, %v2478_v22 }
 0xbd8   : > { %v2479_v27 = vmul.f32 %v3467_v15, %v2470_v24 }
 0xbd9   : > { %v4081_v29 = vpop.eup %4080 }
 0xbda   : > { %v2488_v30 = vadd.f32 %v3468_v21, %v2479_v27  ;;  %v2471_v28 = vmul.f32 %v4081_v29, %v2447_v8 }
 0xbdc   : > { %v4877_v32 = vpack.c.bf16 %v2488_v30, %v2487_v19  ;;  %v2480_v34 = vmul.f32 %v3467_v15, %v2471_v28 }
 0xbde   : > { %v2489_v35 = vadd.f32 %v3468_v21, %v2480_v34 }
 0xbe0   : > { %v4879_v26 = vpack.c.bf16 %v2489_v35, %v2489_v35 }
 0xbe1 LB: >> { %v4193_v39 = vmov 0   ;;  %s3532_s8 = sshll.u32 %s4173_s23, 6  ;;  %s3533_s25 = sshll.u32 %s4173_s23, 8  ;;  %v2516_v18 = vlaneseq  ;;  %s4173_s23 = sphi %s4887_s23, %s2497_s23   ;;  %v4169_v37 = vphi %v4885_v37, %v5090_v37   ;;  %v4165_v31 = vphi %v4883_v31, %v5089_v31   ;;  %v4161_v33 = vphi %v4881_v33, %v5088_v33  }
 0xbe2   : >> { %2614 = vmatprep.mubr.bf16.mxu0 %v4193_v39  ;;  %2665 = vmatprep.mubr.bf16.mxu1 %v4193_v39  ;;  %s2503_s12 = scalar_lea.vmem %s4385_s22, %s3532_s8  ;;  %s4905_s1 = scalar_lea.vmem %s4397_s9, %s3533_s25 }
 0xbe3   : >> { %v4085_v40 = vld [vmem:[%s2503_s12 + $0x4] ss:$16 sps:$4 sm:$0xff]   ;;  %v4087_v36 = vld [vmem:[%s2503_s12 + $0xc] ss:$16 sps:$4 sm:$0xff]   ;;  %v4089_v38 = vld [vmem:[%s2503_s12] ss:$16 sps:$4 sm:$0xff]  }
 0xbe4   : >> { %2582 = vmatprep.subr.bf16.mxu0 %v4085_v40  ;;  %v4090_v42 = vld [vmem:[%s2503_s12 + $0x8] ss:$16 sps:$4 sm:$0xff]   ;;  %2633 = vmatprep.subr.bf16.mxu1 %v4087_v36  ;;  %v4091_v44 = vld [vmem:[%s2503_s12 + $0x24] ss:$16 sps:$4 sm:$0xff]   ;;  %v4093_v45 = vld [vmem:[%s2503_s12 + $0x2c] ss:$16 sps:$4 sm:$0xff]  }
 0xbe5   : >> { %2583 = vmatpush1.bf16.msra.mxu0 %v4089_v38  ;;  %2634 = vmatpush1.bf16.msra.mxu1 %v4090_v42  ;;  %v4095_v41 = vld [vmem:[%s2503_s12 + $0x20] ss:$16 sps:$4 sm:$0xff]   ;;  %v4096_v49 = vld [vmem:[%s2503_s12 + $0x28] ss:$16 sps:$4 sm:$0xff]   ;;  %s3471_s6 = sshll.u32 %s4173_s23, 2  ;;  %v2517_v52 = vshrl.u32 %v2516_v18, 7 }
 0xbe6   : >> { %2584 = vmatprep.subr.bf16.mxu0 %v4091_v44  ;;  %2635 = vmatprep.subr.bf16.mxu1 %v4093_v45  ;;  %v4097_v55 = vld [vmem:[%s4905_s1 + $0x40] sm:$0xff]   ;;  %v4101_v47 = vld [vmem:[%s4905_s1 + $0x48] sm:$0xff]   ;;  %v4105_v59 = vld [vmem:[%s4905_s1 + $0x50] sm:$0xff]   ;;  %s2513_s27 = scalar_lea.vmem %s4391_s29, %s3471_s6  ;;  %s2497_s23 = sadd.s32 1, %s4173_s23  }
 0xbe7   : >> { %v4098_v48 = vld [vmem:[%s4905_s1 + $0xc0] sm:$0xff]   ;;  %v4102_v56 = vld [vmem:[%s4905_s1 + $0xc8] sm:$0xff]   ;;  %v4106_v60 = vld [vmem:[%s4905_s1 + $0xd0] sm:$0xff]   ;;  %v2518_v16 = vsub.s32 0, %v2517_v52  ;;  %v2526_v15 = vsub.s32 2, %v2517_v52  ;;  %v2522_v22 = vsub.s32 1, %v2517_v52 }
 0xbe8   : >> { %v4099_v43 = vld [vmem:[%s4905_s1] sm:$0xff]   ;;  %v4103_v57 = vld [vmem:[%s4905_s1 + $0x8] sm:$0xff]   ;;  %v4107_v62 = vld [vmem:[%s4905_s1 + $0x10] sm:$0xff]   ;;  %v2530_v24 = vsub.s32 3, %v2517_v52  ;;  %p2494_p5 = scmp.ge.s32.totalorder %s2497_s23, 4  }
 0xbe9   : >> { %2585 = vmatpush1.bf16.msra.mxu0 %v4095_v41  ;;  %2636 = vmatpush1.bf16.msra.mxu1 %v4096_v49  ;;  %v4100_v51 = vld [vmem:[%s4905_s1 + $0x80] sm:$0xff]   ;;  %v4104_v53 = vld [vmem:[%s4905_s1 + $0x88] sm:$0xff]   ;;  %v4108_v0 = vld [vmem:[%s4905_s1 + $0x90] sm:$0xff]   ;;  %s5091_s30 = scalar_lea.vmem (%p2494_p5), %s5039_s21, %s4344_s7  ;;  %p3519_p6 = scmp.ne.s32.totalorder (%p2494_p5), %s4338_s3, 1 }
 0xbea   : >> { %3596 = vmatprep.subr.bf16.mxu0 %v4097_v55  ;;  %3624 = vmatprep.subr.bf16.mxu1 %v4098_v48  ;;  %v4109_v1 = vld [vmem:[%s4905_s1 + $0x58] sm:$0xff]   ;;  %v4113_v4 = vld [vmem:[%s4905_s1 + $0x60] sm:$0xff]   ;;  %v4117_v8 = vld [vmem:[%s4905_s1 + $0x68] sm:$0xff]  }
 0xbeb   : >> { %v4110_v2 = vld [vmem:[%s4905_s1 + $0xd8] sm:$0xff]   ;;  %v4114_v54 = vld [vmem:[%s4905_s1 + $0xe0] sm:$0xff]   ;;  %v4118_v9 = vld [vmem:[%s4905_s1 + $0xe8] sm:$0xff]  }
 0xbec   : >> { %3480 = vmatmul.mubr.msk.bf16.vlgmr.msra.gmra.mrb[0].mxu0 %vm1157_vm2, %v4877_v32  ;;  %3482 = vmatmul.mubr.msk.bf16.vlgmr.msra.gmra.mrb[0].mxu1 %vm1157_vm2, %v4877_v32  ;;  %v4111_v3 = vld [vmem:[%s4905_s1 + $0x18] sm:$0xff]   ;;  %v4115_v61 = vld [vmem:[%s4905_s1 + $0x20] sm:$0xff]   ;;  %v4119_v10 = vld [vmem:[%s4905_s1 + $0x28] sm:$0xff]  }
 0xbed   : >> { %2624 = vmatprep.mubr.bf16.mxu0 %v4193_v39  ;;  %2675 = vmatprep.mubr.bf16.mxu1 %v4193_v39  ;;  %v4112_v6 = vld [vmem:[%s4905_s1 + $0x98] sm:$0xff]   ;;  %v4116_v7 = vld [vmem:[%s4905_s1 + $0xa0] sm:$0xff]   ;;  %v4120_v13 = vld [vmem:[%s4905_s1 + $0xa8] sm:$0xff]  }
 0xbee   : >> { %3597 = vmatpush3.bf16.msra.mxu0 %v4099_v43  ;;  %3625 = vmatpush3.bf16.msra.mxu1 %v4100_v51  ;;  %v4121_v14 = vld [vmem:[%s4905_s1 + $0x70] sm:$0xff]   ;;  %v4125_v25 = vld [vmem:[%s4905_s1 + $0x78] sm:$0xff]   ;;  %v2514_v20 = vld [vmem:[%s2513_s27] sm:$0xf] }
 0xbef   : >> { %3598 = vmatprep.subr.bf16.mxu0 %v4101_v47  ;;  %3626 = vmatprep.subr.bf16.mxu1 %v4102_v56  ;;  %v4122_v63 = vld [vmem:[%s4905_s1 + $0xf0] sm:$0xff]   ;;  %v4126_v17 = vld [vmem:[%s4905_s1 + $0xf8] sm:$0xff]   ;;  %v2519_v21 = vrot.slane %v2514_v20, %v2518_v16  ;;  %v2527_v27 = vrot.slane %v2514_v20, %v2526_v15  ;;  %v2523_v29 = vrot.slane %v2514_v20, %v2522_v22 }
 0xbf0   : >> { %v4123_v5 = vld [vmem:[%s4905_s1 + $0x30] sm:$0xff]   ;;  %v4127_v12 = vld [vmem:[%s4905_s1 + $0x38] sm:$0xff]   ;;  %v2531_v19 = vrot.slane %v2514_v20, %v2530_v24 }
 0xbf1   : >> { %v4124_v23 = vld [vmem:[%s4905_s1 + $0xb0] sm:$0xff]   ;;  %v4128_v11 = vld [vmem:[%s4905_s1 + $0xb8] sm:$0xff]  }
 0xbf2   : >> { %3599 = vmatpush3.bf16.msra.mxu0 %v4103_v57  ;;  %3627 = vmatpush3.bf16.msra.mxu1 %v4104_v53 }
 0xbf3   : >> { %3600 = vmatprep.subr.bf16.mxu0 %v4105_v59  ;;  %3628 = vmatprep.subr.bf16.mxu1 %v4106_v60 }
 0xbf4   : >> { %3481 = vmatmul.mubr.msk.bf16.gmra.mrb[4].mxu0 %vm1157_vm2, %v4879_v26  ;;  %3483 = vmatmul.mubr.msk.bf16.gmra.mrb[4].mxu1 %vm1157_vm2, %v4879_v26 }
 0xbf6   : >> { %3601 = vmatpush3.bf16.msra.mxu0 %v4107_v62  ;;  %3629 = vmatpush3.bf16.msra.mxu1 %v4108_v0 }
 0xbf7   : >> { %3602 = vmatprep.subr.bf16.mxu0 %v4109_v1  ;;  %3630 = vmatprep.subr.bf16.mxu1 %v4110_v2 }
 0xbfa   : >> { %3603 = vmatpush3.bf16.msra.mxu0 %v4111_v3  ;;  %3631 = vmatpush3.bf16.msra.mxu1 %v4112_v6 }
 0xbfb   : >> { %3604 = vmatprep.subr.bf16.mxu0 %v4113_v4  ;;  %3632 = vmatprep.subr.bf16.mxu1 %v4114_v54 }
 0xbfe   : >> { %3605 = vmatpush3.bf16.msra.mxu0 %v4115_v61  ;;  %3633 = vmatpush3.bf16.msra.mxu1 %v4116_v7 }
 0xbff   : >> { %3606 = vmatprep.subr.bf16.mxu0 %v4117_v8  ;;  %3634 = vmatprep.subr.bf16.mxu1 %v4118_v9 }
 0xc02   : >> { %3607 = vmatpush3.bf16.msra.mxu0 %v4119_v10  ;;  %3635 = vmatpush3.bf16.msra.mxu1 %v4120_v13 }
 0xc03   : >> { %3608 = vmatprep.subr.bf16.mxu0 %v4121_v14  ;;  %3636 = vmatprep.subr.bf16.mxu1 %v4122_v63 }
 0xc06   : >> { %3609 = vmatpush3.bf16.msra.mxu0 %v4123_v5  ;;  %3637 = vmatpush3.bf16.msra.mxu1 %v4124_v23 }
 0xc07   : >> { %3610 = vmatprep.subr.bf16.mxu0 %v4125_v25  ;;  %3638 = vmatprep.subr.bf16.mxu1 %v4126_v17 }
 0xc0a   : >> { %3611 = vmatpush3.bf16.msra.mxu0 %v4127_v12  ;;  %3639 = vmatpush3.bf16.msra.mxu1 %v4128_v11 }
 0xcbf   : >> { %v2616_v30 = vpop.f32.mrb[0].mxu0  ;;  %v2667_v28 = vpop.f32.mrb[0].mxu1 }
 0xcc0   : >> { %v2617_v34 = vadd.f32 %v2616_v30, %v2519_v21  ;;  %v2668_v35 = vadd.f32 %v2667_v28, %v2527_v27  ;;  %v2618_v39 = vpop.f32.mrb[1].mxu0  ;;  %v2669_v40 = vpop.f32.mrb[1].mxu1 }
 0xcc1   : >> { %v2619_v36 = vadd.f32 %v2618_v39, %v2523_v29  ;;  %v2670_v38 = vadd.f32 %v2669_v40, %v2531_v19  ;;  %v2620_v42 = vpop.f32.mrb[2].mxu0  ;;  %v2671_v44 = vpop.f32.mrb[2].mxu1 }
 0xcc2   : >> { %v2621_v45 = vadd.f32 %v2620_v42, %v2519_v21  ;;  %v2672_v41 = vadd.f32 %v2671_v44, %v2527_v27  ;;  %v2622_v49 = vpop.f32.mrb[3].mxu0  ;;  %v2673_v55 = vpop.f32.mrb[3].mxu1  ;;  %v2684_v51 = vmax.f32 %v2617_v34, 0.0  ;;  %v2686_v47 = vmax.f32 %v2668_v35, 0.0 }
 0xcc3   : >> { %v2623_v48 = vadd.f32 %v2622_v49, %v2523_v29  ;;  %v2674_v43 = vadd.f32 %v2673_v55, %v2531_v19  ;;  %v2685_v53 = vmax.f32 %v2619_v36, 0.0  ;;  %v2687_v59 = vmax.f32 %v2670_v38, 0.0 }
 0xcc4   : >> { %v2688_v56 = vmax.f32 %v2621_v45, 0.0  ;;  %v2690_v57 = vmax.f32 %v2672_v41, 0.0 }
 0xcc5   : >> { %v2689_v60 = vmax.f32 %v2623_v48, 0.0  ;;  %v2691_v62 = vmax.f32 %v2674_v43, 0.0 }
 0xcc6   : >> { %v2696_v0 = vpack.c.bf16 %v2688_v56, %v2684_v51  ;;  %v2698_v1 = vpack.c.bf16 %v2690_v57, %v2686_v47 }
 0xcc7   : >> { %v2697_v2 = vpack.c.bf16 %v2689_v60, %v2685_v53  ;;  %v2699_v3 = vpack.c.bf16 %v2691_v62, %v2687_v59  ;;  %v2626_v6 = vpop.f32.mrb[4].mxu0  ;;  %v2677_v4 = vpop.f32.mrb[4].mxu1  ;;  %v3518_v53 = vld [vmem:[%s5091_s30] ss:$0 sm:$0xff] (%p2494_p5) }
 0xcc8   : >> { %v2627_v54 = vadd.f32 %v2626_v6, %v2519_v21  ;;  %v2678_v61 = vadd.f32 %v2677_v4, %v2527_v27  ;;  %v2628_v7 = vpop.f32.mrb[5].mxu0  ;;  %v2679_v8 = vpop.f32.mrb[5].mxu1 }
 0xcc9   : >> { %v2629_v9 = vadd.f32 %v2628_v7, %v2523_v29  ;;  %v2680_v10 = vadd.f32 %v2679_v8, %v2531_v19  ;;  %v2630_v13 = vpop.f32.mrb[6].mxu0  ;;  %v2681_v14 = vpop.f32.mrb[6].mxu1  ;;  %2995 = vmatprep.mubr.bf16.mxu0 %v2697_v2  ;;  %3043 = vmatprep.mubr.bf16.mxu1 %v2699_v3 }
 0xcca   : >> { %v2631_v63 = vpop.f32.mrb[7].mxu0  ;;  %v2682_v5 = vpop.f32.mrb[7].mxu1  ;;  %2996 = vmatmul.mubr.bf16.vlgmr.msra.gmra.mrb[8].mxu0 %v2696_v0  ;;  %3044 = vmatmul.mubr.bf16.vlgmr.msra.gmra.mrb[8].mxu1 %v2698_v1  ;;  %v2692_v17 = vmax.f32 %v2627_v54, 0.0  ;;  %v2694_v12 = vmax.f32 %v2678_v61, 0.0 }
 0xccb   : >> { %v2693_v23 = vmax.f32 %v2629_v9, 0.0  ;;  %v2695_v25 = vmax.f32 %v2680_v10, 0.0 }
 0xccc   : >> { %v2700_v52 = vpack.c.bf16 %v2692_v17, %v2692_v17  ;;  %v2702_v16 = vpack.c.bf16 %v2694_v12, %v2694_v12 }
 0xccd   : >> { %v2701_v11 = vpack.c.bf16 %v2693_v23, %v2693_v23  ;;  %v2703_v18 = vpack.c.bf16 %v2695_v25, %v2695_v25 }
 0xccf   : >> { %3003 = vmatprep.mubr.bf16.mxu0 %v2701_v11  ;;  %3051 = vmatprep.mubr.bf16.mxu1 %v2703_v18 }
 0xcd2   : >> { %3004 = vmatmul.mubr.bf16.gmra.mrb[12].mxu0 %v2700_v52  ;;  %3052 = vmatmul.mubr.bf16.gmra.mrb[12].mxu1 %v2702_v16 }
 0xd9d   : >> { %v3612_v15 = vpop.f32.mrb[8].mxu0  ;;  %v3640_v20 = vpop.f32.mrb[8].mxu1 }
 0xd9e   : >> { %v3613_v22 = vpop.f32.mrb[9].mxu0  ;;  %v3641_v24 = vpop.f32.mrb[9].mxu1 }
 0xd9f   : >> { %v3614_v21 = vadd.f32 %v3613_v22, %v3612_v15  ;;  %v3642_v27 = vadd.f32 %v3641_v24, %v3640_v20  ;;  %v3615_v29 = vpop.f32.mrb[10].mxu0  ;;  %v3643_v19 = vpop.f32.mrb[10].mxu1 }
 0xda0   : >> { %v3616_v30 = vpop.f32.mrb[11].mxu0  ;;  %v3644_v28 = vpop.f32.mrb[11].mxu1 }
 0xda1   : >> { %v3046_v34 = vadd.f32 %v3642_v27, %v3614_v21  ;;  %v3617_v35 = vadd.f32 %v3616_v30, %v3615_v29  ;;  %v3645_v39 = vadd.f32 %v3644_v28, %v3643_v19 }
 0xda3   : >> { %v3059_v40 = vadd.f32 %v4169_v37, %v3046_v34   ;;  %v3049_v36 = vadd.f32 %v3645_v39, %v3617_v35 }
 0xda5   : >> { %v3060_v38 = vadd.f32 %v4165_v31, %v3049_v36   ;;  %v3618_v42 = vpop.f32.mrb[12].mxu0  ;;  %v3646_v44 = vpop.f32.mrb[12].mxu1  ;;  %v5090_v37 = vmov %v3059_v40 }
 0xda6   : >> { %v3619_v45 = vpop.f32.mrb[13].mxu0  ;;  %v3647_v41 = vpop.f32.mrb[13].mxu1  ;;  %v3062_v37 = vadd.f32 (%p2494_p5), %v3059_v40, %v4849_v46 }
 0xda7   : >> { %v3620_v49 = vadd.f32 %v3619_v45, %v3618_v42  ;;  %v3648_v55 = vadd.f32 %v3647_v41, %v3646_v44  ;;  %v3621_v48 = vpop.f32.mrb[14].mxu0  ;;  %v3649_v43 = vpop.f32.mrb[14].mxu1  ;;  %v5089_v31 = vmov %v3060_v38  ;;  %2496 = sbr.rel (!%p2494_p5) target bundleno = 3041 (0xbe1), region = 201  ;;  %v3063_v59 = vadd.f32 (%p2494_p5), %v3060_v38, %v4853_v50 }
 0xda8   : >> { %v3622_v51 = vpop.f32.mrb[15].mxu0  ;;  %v3650_v47 = vpop.f32.mrb[15].mxu1  ;;  %v3072_v62 = vadd.f32 (%p2494_p5), %v3518_v53, %v3062_v37 }
 0xda9   : >> { %v3054_v56 = vadd.f32 %v3648_v55, %v3620_v49  ;;  %v3073_v0 = vadd.f32 (%p2494_p5), %v3518_v53, %v3063_v59 }
 0xdaa   : > { %3075 = vst.msk [vmem:[#allocation2] sm:$0xff] (%p2494_p5), %vm1157_vm2, %v3072_v62 }
 0xdab   : >> { %v3061_v57 = vadd.f32 %v4161_v33, %v3054_v56   ;;  %3076 = vst.msk [vmem:[#allocation2 + $0x8] sm:$0xff] (%p2494_p5), %vm1157_vm2, %v3073_v0 }
 0xdad   : >> { %v5088_v33 = vmov %v3061_v57  ;;  %v3064_v60 = vadd.f32 (%p2494_p5), %v3061_v57, %v4857_v58 }
 0xdae   : > { %3081 = sbr.rel (%p3519_p6) target bundleno = 4035 (0xfc3), region = 139  ;;  %v3087_v46 = vsel (!%p3519_p6), %vm1157_vm2, %v3073_v0, 0.0  ;;  %v3084_v50 = vsel (!%p3519_p6), %vm1157_vm2, %v3072_v62, 0.0  ;;  %v3141_v14 = vld [vmem:[%s5042_s24] sm:$0xff] (!%p3519_p6)  ;;  %v3142_v63 = vld [vmem:[%s5042_s24 + $0x8] sm:$0xff] (!%p3519_p6)  ;;  %v3143_v5 = vld [vmem:[%s5042_s24 + $0x10] sm:$0xff] (!%p3519_p6) }
 0xdaf   : > { %v3074_v1 = vadd.f32 %v3518_v53, %v3064_v60  ;;  %3088 = vadd.xlane.f32.xlu0 (!%p3519_p6), %v3087_v46  ;;  %v4194_v23 = vmov (!%p3519_p6), 0.0|0.0   ;;  %v3907_v25 = vpack.c.bf16 (!%p3519_p6), %v3142_v63, %v3141_v14  ;;  %v3144_v17 = vld [vmem:[%s5042_s24 + $0x18] sm:$0xff] (!%p3519_p6)  ;;  %vm4195_vm8 = vmmov (!%p3519_p6), 0   ;;  %s5092_s1 = sld [smem:[#allocation16_spill]] (!%p3519_p6)  ;;  %s5093_s0 = sld [smem:[#allocation17_spill]] (!%p3519_p6) }
 0xdb0   : > { %3912 = vmatprep.subr.bf16.mxu1 (!%p3519_p6), %v4194_v23  ;;  %3906 = vmatprep.subr.bf16.mxu0 (!%p3519_p6), %v4194_v23  ;;  %v4196_v12 = vmov (!%p3519_p6), 0.0   ;;  %v3910_v11 = vpack.c.bf16 (!%p3519_p6), %v3144_v17, %v3143_v5  ;;  %s5094_s22 = sld [smem:[#allocation18_spill]] (!%p3519_p6)  ;;  %s5095_s29 = sld [smem:[#allocation19_spill]] (!%p3519_p6) }
 0xdb1   : > { %3077 = vst.msk [vmem:[#allocation2 + $0x10] sm:$0xff] %vm1157_vm2, %v3074_v1  ;;  %v3090_v32 = vsel (!%p3519_p6), %vm1157_vm2, %v3074_v1, 0.0  ;;  %3824 = vmatprep.mubr.msk.f32.mxu1 (!%p3519_p6), %vm4195_vm8, %v4196_v12  ;;  %3821 = vmatprep.mubr.msk.f32.mxu0 (!%p3519_p6), %vm4195_vm8, %v4196_v12 }
 0xdb2   : > { %3091 = vadd.xlane.f32.xlu1 (!%p3519_p6), %v3090_v32  ;;  %3914 = vmatpush3.bf16.msra.mxu1 (!%p3519_p6), %v3907_v25 }
 0xdb3   : > { %3085 = vadd.xlane.f32.xlu0 (!%p3519_p6), %v3084_v50  ;;  %3908 = vmatpush3.bf16.msra.mxu0 (!%p3519_p6), %v3907_v25 }
 0xdb4   : > { %3913 = vmatprep.subr.bf16.mxu1 (!%p3519_p6), %v4194_v23  ;;  %3909 = vmatprep.subr.bf16.mxu0 (!%p3519_p6), %v4194_v23 }
 0xdb5   : > { %v3520_v19 = vld [vmem:[%s5092_s1] ss:$0 sm:$0xff] }
 0xdb6   : > { %3915 = vmatpush3.bf16.msra.mxu1 %v3910_v11  ;;  %v3521_v28 = vld [vmem:[%s5093_s0] ss:$0 sm:$0xff] }
 0xdb7   : > { %3911 = vmatpush3.bf16.msra.mxu0 %v3910_v11  ;;  %v3522_v49 = vld [vmem:[%s5094_s22] ss:$0 sm:$0xff] }
 0xe3c   : > { %v3089_v58 = vpop.xlane.xlu0 %3088 }
 0xe3d   : > { %v3094_v33 = vmul.f32 0.03125, %v3089_v58 }
 0xe3f   : > { %v3092_v26 = vpop.xlane.xlu1 %3091  ;;  %v3097_v2 = vsub.f32 %v3073_v0, %v3094_v33 }
 0xe40   : > { %v3095_v31 = vmul.f32 0.03125, %v3092_v26  ;;  %v3086_v6 = vpop.xlane.xlu0 %3085 }
 0xe41   : > { %v3093_v4 = vmul.f32 0.03125, %v3086_v6  ;;  %v3100_v54 = vmul.f32 %v3097_v2, %v3097_v2 }
 0xe42   : > { %v3098_v3 = vsub.f32 %v3074_v1, %v3095_v31 }
 0xe43   : > { %v3096_v7 = vsub.f32 %v3072_v62, %v3093_v4  ;;  %v3105_v8 = vsel %vm1157_vm2, %v3100_v54, 0.0 }
 0xe44   : > { %v3101_v61 = vmul.f32 %v3098_v3, %v3098_v3  ;;  %3106 = vadd.xlane.f32.xlu1 %v3105_v8 }
 0xe45   : > { %v3099_v10 = vmul.f32 %v3096_v7, %v3096_v7 }
 0xe46   : > { %v3108_v9 = vsel %vm1157_vm2, %v3101_v61, 0.0 }
 0xe47   : > { %v3102_v13 = vsel %vm1157_vm2, %v3099_v10, 0.0 }
 0xe48   : > { %3109 = vadd.xlane.f32.xlu1 %v3108_v9  ;;  %3103 = vadd.xlane.f32.xlu0 %v3102_v13 }
 0xed1   : > { %v3107_v18 = vpop.xlane.xlu1 %3106 }
 0xed2   : > { %v3112_v52 = vmul.f32 0.03125, %v3107_v18 }
 0xed4   : > { %v3115_v16 = vadd.f32 1e-05, %v3112_v52 }
 0xed5   : > { %v3110_v15 = vpop.xlane.xlu1 %3109  ;;  %v3104_v20 = vpop.xlane.xlu0 %3103 }
 0xed6   : > { %4129 = vrsqrt.f32 %v3115_v16  ;;  %v3113_v22 = vmul.f32 0.03125, %v3110_v15  ;;  %v3111_v24 = vmul.f32 0.03125, %v3104_v20 }
 0xed8   : > { %v3116_v21 = vadd.f32 1e-05, %v3113_v22  ;;  %v3114_v27 = vadd.f32 1e-05, %v3111_v24 }
 0xeda   : > { %4131 = vrsqrt.f32 %v3116_v21 }
 0xedb   : > { %4133 = vrsqrt.f32 %v3114_v27 }
 0xee0   : > { %v4130_v29 = vpop.eup %4129 }
 0xee1   : > { %v3121_v30 = vmul.f32 %v4130_v29, %v3097_v2 }
 0xee3   : > { %v3130_v34 = vmul.f32 %v3520_v19, %v3121_v30 }
 0xee4   : > { %v4132_v35 = vpop.eup %4131 }
 0xee5   : > { %v4134_v39 = vpop.eup %4133  ;;  %v3139_v40 = vadd.f32 %v3521_v28, %v3130_v34  ;;  %v3122_v36 = vmul.f32 %v4132_v35, %v3098_v3 }
 0xee6   : > { %v3120_v38 = vmul.f32 %v4134_v39, %v3096_v7 }
 0xee7   : > { %3825 = vmatmul.mubr.msk.f32.vlgmr.msra.gmra.mrb[0].mxu1 %vm1157_vm2, %v3139_v40  ;;  %v3131_v42 = vmul.f32 %v3520_v19, %v3122_v36 }
 0xee8   : > { %3827 = vmatprep.mubr.msk.f32.mxu1 %vm4195_vm8, %v4196_v12  ;;  %v3129_v44 = vmul.f32 %v3520_v19, %v3120_v38 }
 0xee9   : > { %v3140_v45 = vadd.f32 %v3521_v28, %v3131_v42 }
 0xeea   : > { %v3138_v41 = vadd.f32 %v3521_v28, %v3129_v44 }
 0xeeb   : > { %3828 = vmatmul.mubr.msk.f32.gmra.mrb[2].mxu1 %vm1157_vm2, %v3140_v45 }
 0xeec   : > { %3822 = vmatmul.mubr.msk.f32.vlgmr.msra.gmra.mrb[0].mxu0 %vm1157_vm2, %v3138_v41 }
 0xfba   : > { %v3232_v55 = vpop.f32.mrb[0].mxu1 }
 0xfbb   : > { %v3233_v48 = vadd.f32 %v3522_v49, %v3232_v55  ;;  %v3826_v43 = vpop.f32.mrb[1].mxu1 }
 0xfbd   : > { %3242 = vst [vmem:[%s5095_s29 + $0x8] sm:$0xff] %v3233_v48 }
 0xfbe   : > { %v3237_v51 = vpop.f32.mrb[2].mxu1 }
 0xfbf   : > { %v3227_v47 = vpop.f32.mrb[0].mxu0  ;;  %v3238_v56 = vadd.f32 %v3522_v49, %v3237_v51  ;;  %v3829_v57 = vpop.f32.mrb[3].mxu1 }
 0xfc0   : > { %v3228_v37 = vadd.f32 %v3522_v49, %v3227_v47  ;;  %v3823_v53 = vpop.f32.mrb[1].mxu0 }
 0xfc1   : > { %3243 = vst [vmem:[%s5095_s29 + $0x10] sm:$0xff] %v3238_v56 }
 0xfc2   : > { %3241 = vst [vmem:[%s5095_s29] sm:$0xff] %v3228_v37 }
 0xfc3 PF: > { %s5096_s12 = sld [smem:[#allocation3_spill]] }
 0xfc9   : > { %s36_s27 = sadd.s32 1, %s5096_s12  }
 0xfca   : > { %p33_p7 = scmp.ge.s32.totalorder %s36_s27, 4  }
 0xfcc   :  { %35 = sbr.rel (!%p33_p7) target bundleno = 17 (0x11), region = 212 }

</bundles_post_ra>
